<compile_context>
chip_gen: v6e
topology: v6e:2x2x1
jax: 0.10.0
libtpu: 0.0.40
codegen_flags: <defaults>
</compile_context>

<pallas_src>
import jax
import jax.numpy as jnp
from jax.experimental import pallas as pl
from jax.experimental.pallas import tpu as pltpu

NEG_SLOPE = 0.01          # torch.nn.functional.leaky_relu default negative_slope
KH = KW = 3               # conv kernel size
STRIDE = 2                # conv stride
C1, C2, C3 = 16, 32, 32   # conv output channels
FC1_N, FC2_N = 512, 256   # fc hidden sizes


# ------------------------------ small helpers ------------------------------- #
def _round_up(n, m):
    return ((n + m - 1) // m) * m


def _conv_size_out(size, kernel_size=3, stride=2):
    return (size - (kernel_size - 1) - 1) // stride + 1


def _full_spec(shape):
    shape = tuple(int(s) for s in shape)
    return pl.BlockSpec(shape, lambda: (0,) * len(shape))


def make_config(w, h, c, num_actions, batch):
    hs, ws = [h], [w]
    for _ in range(3):
        hs.append(_conv_size_out(hs[-1]))
        ws.append(_conv_size_out(ws[-1]))
    assert hs[-1] >= 1 and ws[-1] >= 1, "input too small for 3 stride-2 convs"
    chans = [c, C1, C2, C3]
    layers = []
    for l in range(3):
        layers.append(dict(ih=hs[l], iw=ws[l], cin=chans[l],
                           oh=hs[l + 1], ow=ws[l + 1], cout=chans[l + 1]))
    return dict(
        batch=batch, bp=_round_up(batch, 8), cin=c, num_actions=num_actions,
        h1=h, w1=w, layers=layers, h4=hs[3], w4=ws[3],
        lin_in=hs[3] * ws[3] * C3,
        a_pad=_round_up(num_actions, 128),       # lane-dense output width
    )


# ------------------------------ fused kernel -------------------------------- #
def _make_fused_dqn_kernel(cfg):
    h4 = cfg["h4"]

    def leaky(z):
        return jnp.where(z > 0, z, NEG_SLOPE * z)

    def conv_layer(x_bf16, s_ref, a_ref, bias_ref):
        # 3 kernel-row taps; each tap = (stride-2 row-select matmul) + (W-unrolled matmul).
        acc = None
        for i in range(KH):
            rows = jnp.dot(s_ref[i], x_bf16,
                           preferred_element_type=jnp.float32).astype(jnp.bfloat16)
            term = jnp.dot(rows, a_ref[i], preferred_element_type=jnp.float32)
            acc = term if acc is None else acc + term
        return leaky(acc + bias_ref[...]).astype(jnp.bfloat16)

    def kernel(x_ref,
               s1_ref, a1_ref, cb1_ref,
               s2_ref, a2_ref, cb2_ref,
               s3_ref, a3_ref, cb3_ref,
               p_ref, wf1_ref, bf1_ref,
               wf2_ref, bf2_ref, wf3_ref, bf3_ref,
               out_ref):
        y = x_ref[...]                                   # (Bp*H1, W1*Cin) bf16
        y = conv_layer(y, s1_ref, a1_ref, cb1_ref)       # (Bp*H2, W2*C1)
        y = conv_layer(y, s2_ref, a2_ref, cb2_ref)       # (Bp*H3, W3*C2)
        y = conv_layer(y, s3_ref, a3_ref, cb3_ref)       # (Bp*H4, W4*C3)

        # fc1 with the NCHW-order flatten folded in: rows (b, h) are gathered per h with a
        # tiny selection matmul and hit the matching pre-permuted block of the fc1 weight.
        acc = None
        for hh in range(h4):
            rows = jnp.dot(p_ref[hh], y,
                           preferred_element_type=jnp.float32).astype(jnp.bfloat16)
            term = jnp.dot(rows, wf1_ref[hh], preferred_element_type=jnp.float32)
            acc = term if acc is None else acc + term
        z = leaky(acc + bf1_ref[...]).astype(jnp.bfloat16)                    # (Bp, 512)
        z = leaky(jnp.dot(z, wf2_ref[...], preferred_element_type=jnp.float32)
                  + bf2_ref[...]).astype(jnp.bfloat16)                        # (Bp, 256)
        out_ref[...] = (jnp.dot(z, wf3_ref[...], preferred_element_type=jnp.float32)
                        + bf3_ref[...])                                       # (Bp, 128)

    return kernel


def build_dqn_forward(cfg):
    kernel = _make_fused_dqn_kernel(cfg)
    B, Bp = cfg["batch"], cfg["bp"]
    h1, w1, cin = cfg["h1"], cfg["w1"], cfg["cin"]
    h4, w4 = cfg["h4"], cfg["w4"]
    a_pad = cfg["a_pad"]

    in_shapes = [(Bp * h1, w1 * cin)]                                  # x2d
    for l in cfg["layers"]:
        in_shapes += [
            (KH, Bp * l["oh"], Bp * l["ih"]),                          # S stack
            (KH, l["iw"] * l["cin"], l["ow"] * l["cout"]),             # A stack
            (1, l["ow"] * l["cout"]),                                  # bias row
        ]
    in_shapes += [
        (h4, Bp, Bp * h4),                                             # flatten selection
        (h4, w4 * C3, FC1_N), (1, FC1_N),                              # fc1 blocks
        (FC1_N, FC2_N), (1, FC2_N),                                    # fc2
        (FC2_N, a_pad), (1, a_pad),                                    # fc3 (lane padded)
    ]

    fused = pl.pallas_call(
        kernel,
        out_shape=jax.ShapeDtypeStruct((Bp, a_pad), jnp.float32),
        in_specs=[_full_spec(s) for s in in_shapes],
        out_specs=_full_spec((Bp, a_pad)),
        compiler_params=pltpu.CompilerParams(vmem_limit_bytes=32 * 1024 * 1024),
    )

    @jax.jit
    def forward(kparams, x_nchw):
        # Wrapper-side layout plumbing only: NCHW -> NHWC, flatten (W, C) onto lanes,
        # pad batch to 8 sublanes, cast to bf16.
        x = jnp.transpose(x_nchw, (0, 2, 3, 1)).reshape(B, h1, w1 * cin)
        x = jnp.pad(x, ((0, Bp - B), (0, 0), (0, 0)))
        x2d = x.reshape(Bp * h1, w1 * cin).astype(jnp.bfloat16)
        out = fused(
            x2d,
            kparams["s1"], kparams["a1"], kparams["cb1"],
            kparams["s2"], kparams["a2"], kparams["cb2"],
            kparams["s3"], kparams["a3"], kparams["cb3"],
            kparams["p"], kparams["wf1"], kparams["bf1"],
            kparams["wf2"], kparams["bf2"],
            kparams["wf3"], kparams["bf3"],
        )
        # Padded batch rows / padded action lanes are sliced away here (keep this slice!).
        return out[:B, :cfg["num_actions"]]

    return forward


# ----------------------------- parameter init -------------------------------- #
def init_dqn_params(key, w, h, c, num_actions):
    convw = _conv_size_out(_conv_size_out(_conv_size_out(w)))
    convh = _conv_size_out(_conv_size_out(_conv_size_out(h)))
    lin_in = convw * convh * 32

    ks = jax.random.split(key, 12)

    def conv_init(kw_, kb_, kh, kwid, cin, cout):
        fan_in = kh * kwid * cin
        bound = 1.0 / jnp.sqrt(fan_in)
        wgt = jax.random.uniform(kw_, (kh, kwid, cin, cout), jnp.float32, -bound, bound)
        bias = jax.random.uniform(kb_, (cout,), jnp.float32, -bound, bound)
        return wgt, bias

    def fc_init(kw_, kb_, cin, cout):
        bound = 1.0 / jnp.sqrt(cin)
        wgt = jax.random.uniform(kw_, (cin, cout), jnp.float32, -bound, bound)
        bias = jax.random.uniform(kb_, (cout,), jnp.float32, -bound, bound)
        return wgt, bias

    p = {}
    p["conv1_w"], p["conv1_b"] = conv_init(ks[0], ks[1], 3, 3, c, C1)
    p["conv2_w"], p["conv2_b"] = conv_init(ks[2], ks[3], 3, 3, C1, C2)
    p["conv3_w"], p["conv3_b"] = conv_init(ks[4], ks[5], 3, 3, C2, C3)
    p["fc1_w"], p["fc1_b"] = fc_init(ks[6], ks[7], lin_in, FC1_N)
    p["fc2_w"], p["fc2_b"] = fc_init(ks[8], ks[9], FC1_N, FC2_N)
    p["fc3_w"], p["fc3_b"] = fc_init(ks[10], ks[11], FC2_N, num_actions)
    return p


def prepare_kernel_params(params, cfg):
    """One-time layout plumbing (host side, per the review):
       * A_i: conv weights unrolled over the W axis -> (IW*Cin, OW*Cout) per kernel row,
         so each conv is 3 taps x 1 large MXU matmul instead of an im2col scatter.
       * S_i: 0/1 row-selection matrices implementing the stride-2 output-row gather.
       * Conv bias tiled over OW to match the (OW*Cout) lane layout.
       * fc1 rows permuted from torch's NCHW-flatten order into per-h (w, c) blocks.
       * fc3 zero-padded to a lane-dense 128-wide output.
       * All matmul operands stored bf16; biases stay f32 as (1, N)."""
    Bp = cfg["bp"]
    h4, w4 = cfg["h4"], cfg["w4"]
    A_act, A_pad = cfg["num_actions"], cfg["a_pad"]

    out = {}
    names = [("conv1_w", "conv1_b"), ("conv2_w", "conv2_b"), ("conv3_w", "conv3_b")]
    for idx, (l, (wn, bn)) in enumerate(zip(cfg["layers"], names), start=1):
        wconv, bconv = params[wn], params[bn]
        ih, iw, ci = l["ih"], l["iw"], l["cin"]
        oh, ow, co = l["oh"], l["ow"], l["cout"]

        # A_i[w*ci + c, ow*co + k] = wconv[i, w - 2*ow, c, k]  (0 <= w - 2*ow < 3)
        A = jnp.zeros((KH, iw * ci, ow * co), jnp.float32)
        for i in range(KH):
            for owi in range(ow):
                for j in range(KW):
                    wcol = STRIDE * owi + j
                    A = A.at[i, wcol * ci:(wcol + 1) * ci,
                             owi * co:(owi + 1) * co].set(wconv[i, j])

        # S_i[b*oh + r, b*ih + 2*r + i] = 1
        rows = jnp.arange(Bp * oh)
        base = (rows // oh) * ih + STRIDE * (rows % oh)
        S = jnp.zeros((KH, Bp * oh, Bp * ih), jnp.float32)
        for i in range(KH):
            S = S.at[i, rows, base + i].set(1.0)

        out[f"s{idx}"] = S.astype(jnp.bfloat16)
        out[f"a{idx}"] = A.astype(jnp.bfloat16)
        out[f"cb{idx}"] = jnp.tile(bconv, ow).reshape(1, ow * co).astype(jnp.float32)

    # Flatten selection: P[h][b, b*h4 + h] = 1 (identity when h4 == 1).
    P = jnp.zeros((h4, Bp, Bp * h4), jnp.float32)
    brows = jnp.arange(Bp)
    for hh in range(h4):
        P = P.at[hh, brows, brows * h4 + hh].set(1.0)
    out["p"] = P.astype(jnp.bfloat16)

    # fc1: block h holds rows for lanes (w, c), taken from torch rows c*(h4*w4) + h*w4 + w.
    wf1 = jnp.zeros((h4, w4 * C3, FC1_N), jnp.float32)
    lane = jnp.arange(w4 * C3)
    wcoord, ccoord = lane // C3, lane % C3
    for hh in range(h4):
        torch_rows = ccoord * (h4 * w4) + hh * w4 + wcoord
        wf1 = wf1.at[hh].set(params["fc1_w"][torch_rows, :])
    out["wf1"] = wf1.astype(jnp.bfloat16)
    out["bf1"] = params["fc1_b"].reshape(1, -1).astype(jnp.float32)

    out["wf2"] = params["fc2_w"].astype(jnp.bfloat16)
    out["bf2"] = params["fc2_b"].reshape(1, -1).astype(jnp.float32)

    wf3 = jnp.zeros((FC2_N, A_pad), jnp.float32).at[:, :A_act].set(params["fc3_w"])
    out["wf3"] = wf3.astype(jnp.bfloat16)
    out["bf3"] = jnp.zeros((1, A_pad), jnp.float32).at[0, :A_act].set(params["fc3_b"])
    return out


# ------------------------------ f32 reference -------------------------------- #
def dqn_reference(params, x_nchw):
    """Pure-JAX f32 reference with PyTorch module semantics."""
    hp = jax.lax.Precision.HIGHEST
    x = jnp.transpose(x_nchw, (0, 2, 3, 1))
    for i in (1, 2, 3):
        w, b = params[f"conv{i}_w"], params[f"conv{i}_b"]
        x = jax.lax.conv_general_dilated(
            x, w, window_strides=(STRIDE, STRIDE), padding="VALID",
            dimension_numbers=("NHWC", "HWIO", "NHWC"), precision=hp)
        x = x + b[None, None, None, :]
        x = jnp.where(x > 0, x, NEG_SLOPE * x)
    n = x.shape[0]
    x = jnp.transpose(x, (0, 3, 1, 2)).reshape(n, -1)       # torch x.view(N, -1)
    x = jnp.dot(x, params["fc1_w"], precision=hp) + params["fc1_b"]
    x = jnp.where(x > 0, x, NEG_SLOPE * x)
    x = jnp.dot(x, params["fc2_w"], precision=hp) + params["fc2_b"]
    x = jnp.where(x > 0, x, NEG_SLOPE * x)
    x = jnp.dot(x, params["fc3_w"], precision=hp) + params["fc3_b"]
    return x


# ---------------------------------- main -------------------------------------- #
if __name__ == "__main__":
    B, C, H, W = 2, 4, 16, 16
    NUM_ACTIONS = 4

    key = jax.random.PRNGKey(0)
    pkey, xkey = jax.random.split(key)
    params = init_dqn_params(pkey, W, H, C, NUM_ACTIONS)
    x = jax.random.normal(xkey, (B, C, H, W), dtype=jnp.float32)

    cfg = make_config(W, H, C, NUM_ACTIONS, B)
    kparams = prepare_kernel_params(params, cfg)   # one-time layout plumbing
    forward = build_dqn_forward(cfg)

    out = jax.block_until_ready(forward(kparams, x))
    assert out.shape == (B, NUM_ACTIONS), out.shape
    assert bool(jnp.all(jnp.isfinite(out)))

    # bf16 MXU operands / f32 accumulation -> compare to f32 reference with relaxed tol.
    ref = dqn_reference(params, x)
    err = float(jnp.max(jnp.abs(out - ref)))
    assert err < 2e-2, f"max abs err vs f32 reference: {err}"
    print("KERNEL_OK")
</pallas_src>

<mosaic_0001>
module attributes {stable_mosaic.version = 11 : i64} {
  func.func @kernel(%arg0: memref<128x64xbf16, #tpu.memory_space<vmem>>, %arg1: memref<3x56x128xbf16, #tpu.memory_space<vmem>>, %arg2: memref<3x64x112xbf16, #tpu.memory_space<vmem>>, %arg3: memref<1x112xf32, #tpu.memory_space<vmem>>, %arg4: memref<3x24x56xbf16, #tpu.memory_space<vmem>>, %arg5: memref<3x112x96xbf16, #tpu.memory_space<vmem>>, %arg6: memref<1x96xf32, #tpu.memory_space<vmem>>, %arg7: memref<3x8x24xbf16, #tpu.memory_space<vmem>>, %arg8: memref<3x96x32xbf16, #tpu.memory_space<vmem>>, %arg9: memref<1x32xf32, #tpu.memory_space<vmem>>, %arg10: memref<1x8x8xbf16, #tpu.memory_space<vmem>>, %arg11: memref<1x32x512xbf16, #tpu.memory_space<vmem>>, %arg12: memref<1x512xf32, #tpu.memory_space<vmem>>, %arg13: memref<512x256xbf16, #tpu.memory_space<vmem>>, %arg14: memref<1x256xf32, #tpu.memory_space<vmem>>, %arg15: memref<256x128xbf16, #tpu.memory_space<vmem>>, %arg16: memref<1x128xf32, #tpu.memory_space<vmem>>, %arg17: memref<8x128xf32, #tpu.memory_space<vmem>>) attributes {dimension_semantics = [], scalar_prefetch = 0 : i64, scratch_operands = 0 : i64, tpu.core_type = #tpu.core_type<tc>} {
    %c0 = arith.constant 0 : index
    %c0_0 = arith.constant 0 : index
    %0 = vector.load %arg0[%c0, %c0_0] : memref<128x64xbf16, #tpu.memory_space<vmem>>, vector<128x64xbf16>
    %c0_1 = arith.constant 0 : index
    %c0_2 = arith.constant 0 : index
    %c0_3 = arith.constant 0 : index
    %1 = vector.load %arg1[%c0_1, %c0_2, %c0_3] : memref<3x56x128xbf16, #tpu.memory_space<vmem>>, vector<1x56x128xbf16>
    %2 = vector.shape_cast %1 : vector<1x56x128xbf16> to vector<56x128xbf16>
    %cst = arith.constant dense<0.000000e+00> : vector<56x64xf32>
    %3 = tpu.matmul %2, %0, %cst {dimension_numbers = #tpu.dot_dimension_numbers<[1], [0], [0], [1], [0, 0, 1, 1], [], []>} : vector<56x128xbf16>, vector<128x64xbf16>, vector<56x64xf32> -> vector<56x64xf32>
    %4 = arith.truncf %3 : vector<56x64xf32> to vector<56x64xbf16>
    %c0_4 = arith.constant 0 : index
    %c0_5 = arith.constant 0 : index
    %c0_6 = arith.constant 0 : index
    %5 = vector.load %arg2[%c0_4, %c0_5, %c0_6] : memref<3x64x112xbf16, #tpu.memory_space<vmem>>, vector<1x64x112xbf16>
    %6 = vector.shape_cast %5 : vector<1x64x112xbf16> to vector<64x112xbf16>
    %cst_7 = arith.constant dense<0.000000e+00> : vector<56x112xf32>
    %7 = tpu.matmul %4, %6, %cst_7 {dimension_numbers = #tpu.dot_dimension_numbers<[1], [0], [0], [1], [0, 0, 1, 1], [], []>} : vector<56x64xbf16>, vector<64x112xbf16>, vector<56x112xf32> -> vector<56x112xf32>
    %c1 = arith.constant 1 : index
    %c0_8 = arith.constant 0 : index
    %c0_9 = arith.constant 0 : index
    %8 = vector.load %arg1[%c1, %c0_8, %c0_9] : memref<3x56x128xbf16, #tpu.memory_space<vmem>>, vector<1x56x128xbf16>
    %9 = vector.shape_cast %8 : vector<1x56x128xbf16> to vector<56x128xbf16>
    %cst_10 = arith.constant dense<0.000000e+00> : vector<56x64xf32>
    %10 = tpu.matmul %9, %0, %cst_10 {dimension_numbers = #tpu.dot_dimension_numbers<[1], [0], [0], [1], [0, 0, 1, 1], [], []>} : vector<56x128xbf16>, vector<128x64xbf16>, vector<56x64xf32> -> vector<56x64xf32>
    %11 = arith.truncf %10 : vector<56x64xf32> to vector<56x64xbf16>
    %c1_11 = arith.constant 1 : index
    %c0_12 = arith.constant 0 : index
    %c0_13 = arith.constant 0 : index
    %12 = vector.load %arg2[%c1_11, %c0_12, %c0_13] : memref<3x64x112xbf16, #tpu.memory_space<vmem>>, vector<1x64x112xbf16>
    %13 = vector.shape_cast %12 : vector<1x64x112xbf16> to vector<64x112xbf16>
    %cst_14 = arith.constant dense<0.000000e+00> : vector<56x112xf32>
    %14 = tpu.matmul %11, %13, %cst_14 {dimension_numbers = #tpu.dot_dimension_numbers<[1], [0], [0], [1], [0, 0, 1, 1], [], []>} : vector<56x64xbf16>, vector<64x112xbf16>, vector<56x112xf32> -> vector<56x112xf32>
    %15 = arith.addf %7, %14 : vector<56x112xf32>
    %c2 = arith.constant 2 : index
    %c0_15 = arith.constant 0 : index
    %c0_16 = arith.constant 0 : index
    %16 = vector.load %arg1[%c2, %c0_15, %c0_16] : memref<3x56x128xbf16, #tpu.memory_space<vmem>>, vector<1x56x128xbf16>
    %17 = vector.shape_cast %16 : vector<1x56x128xbf16> to vector<56x128xbf16>
    %cst_17 = arith.constant dense<0.000000e+00> : vector<56x64xf32>
    %18 = tpu.matmul %17, %0, %cst_17 {dimension_numbers = #tpu.dot_dimension_numbers<[1], [0], [0], [1], [0, 0, 1, 1], [], []>} : vector<56x128xbf16>, vector<128x64xbf16>, vector<56x64xf32> -> vector<56x64xf32>
    %19 = arith.truncf %18 : vector<56x64xf32> to vector<56x64xbf16>
    %c2_18 = arith.constant 2 : index
    %c0_19 = arith.constant 0 : index
    %c0_20 = arith.constant 0 : index
    %20 = vector.load %arg2[%c2_18, %c0_19, %c0_20] : memref<3x64x112xbf16, #tpu.memory_space<vmem>>, vector<1x64x112xbf16>
    %21 = vector.shape_cast %20 : vector<1x64x112xbf16> to vector<64x112xbf16>
    %cst_21 = arith.constant dense<0.000000e+00> : vector<56x112xf32>
    %22 = tpu.matmul %19, %21, %cst_21 {dimension_numbers = #tpu.dot_dimension_numbers<[1], [0], [0], [1], [0, 0, 1, 1], [], []>} : vector<56x64xbf16>, vector<64x112xbf16>, vector<56x112xf32> -> vector<56x112xf32>
    %23 = arith.addf %15, %22 : vector<56x112xf32>
    %c0_22 = arith.constant 0 : index
    %c0_23 = arith.constant 0 : index
    %24 = vector.load %arg3[%c0_22, %c0_23] : memref<1x112xf32, #tpu.memory_space<vmem>>, vector<1x112xf32>
    %25 = vector.broadcast %24 : vector<1x112xf32> to vector<56x112xf32>
    %26 = arith.addf %23, %25 : vector<56x112xf32>
    %cst_24 = arith.constant 0.000000e+00 : f32
    %27 = vector.broadcast %cst_24 : f32 to vector<56x112xf32>
    %28 = arith.cmpf ogt, %26, %27 : vector<56x112xf32>
    %cst_25 = arith.constant 0.00999999977 : f32
    %29 = vector.broadcast %cst_25 : f32 to vector<56x112xf32>
    %30 = arith.mulf %29, %26 : vector<56x112xf32>
    %31 = arith.select %28, %26, %30 : vector<56x112xi1>, vector<56x112xf32>
    %32 = arith.truncf %31 : vector<56x112xf32> to vector<56x112xbf16>
    %c0_26 = arith.constant 0 : index
    %c0_27 = arith.constant 0 : index
    %c0_28 = arith.constant 0 : index
    %33 = vector.load %arg4[%c0_26, %c0_27, %c0_28] : memref<3x24x56xbf16, #tpu.memory_space<vmem>>, vector<1x24x56xbf16>
    %34 = vector.shape_cast %33 : vector<1x24x56xbf16> to vector<24x56xbf16>
    %cst_29 = arith.constant dense<0.000000e+00> : vector<24x112xf32>
    %35 = tpu.matmul %34, %32, %cst_29 {dimension_numbers = #tpu.dot_dimension_numbers<[1], [0], [0], [1], [0, 0, 1, 1], [], []>} : vector<24x56xbf16>, vector<56x112xbf16>, vector<24x112xf32> -> vector<24x112xf32>
    %36 = arith.truncf %35 : vector<24x112xf32> to vector<24x112xbf16>
    %c0_30 = arith.constant 0 : index
    %c0_31 = arith.constant 0 : index
    %c0_32 = arith.constant 0 : index
    %37 = vector.load %arg5[%c0_30, %c0_31, %c0_32] : memref<3x112x96xbf16, #tpu.memory_space<vmem>>, vector<1x112x96xbf16>
    %38 = vector.shape_cast %37 : vector<1x112x96xbf16> to vector<112x96xbf16>
    %cst_33 = arith.constant dense<0.000000e+00> : vector<24x96xf32>
    %39 = tpu.matmul %36, %38, %cst_33 {dimension_numbers = #tpu.dot_dimension_numbers<[1], [0], [0], [1], [0, 0, 1, 1], [], []>} : vector<24x112xbf16>, vector<112x96xbf16>, vector<24x96xf32> -> vector<24x96xf32>
    %c1_34 = arith.constant 1 : index
    %c0_35 = arith.constant 0 : index
    %c0_36 = arith.constant 0 : index
    %40 = vector.load %arg4[%c1_34, %c0_35, %c0_36] : memref<3x24x56xbf16, #tpu.memory_space<vmem>>, vector<1x24x56xbf16>
    %41 = vector.shape_cast %40 : vector<1x24x56xbf16> to vector<24x56xbf16>
    %cst_37 = arith.constant dense<0.000000e+00> : vector<24x112xf32>
    %42 = tpu.matmul %41, %32, %cst_37 {dimension_numbers = #tpu.dot_dimension_numbers<[1], [0], [0], [1], [0, 0, 1, 1], [], []>} : vector<24x56xbf16>, vector<56x112xbf16>, vector<24x112xf32> -> vector<24x112xf32>
    %43 = arith.truncf %42 : vector<24x112xf32> to vector<24x112xbf16>
    %c1_38 = arith.constant 1 : index
    %c0_39 = arith.constant 0 : index
    %c0_40 = arith.constant 0 : index
    %44 = vector.load %arg5[%c1_38, %c0_39, %c0_40] : memref<3x112x96xbf16, #tpu.memory_space<vmem>>, vector<1x112x96xbf16>
    %45 = vector.shape_cast %44 : vector<1x112x96xbf16> to vector<112x96xbf16>
    %cst_41 = arith.constant dense<0.000000e+00> : vector<24x96xf32>
    %46 = tpu.matmul %43, %45, %cst_41 {dimension_numbers = #tpu.dot_dimension_numbers<[1], [0], [0], [1], [0, 0, 1, 1], [], []>} : vector<24x112xbf16>, vector<112x96xbf16>, vector<24x96xf32> -> vector<24x96xf32>
    %47 = arith.addf %39, %46 : vector<24x96xf32>
    %c2_42 = arith.constant 2 : index
    %c0_43 = arith.constant 0 : index
    %c0_44 = arith.constant 0 : index
    %48 = vector.load %arg4[%c2_42, %c0_43, %c0_44] : memref<3x24x56xbf16, #tpu.memory_space<vmem>>, vector<1x24x56xbf16>
    %49 = vector.shape_cast %48 : vector<1x24x56xbf16> to vector<24x56xbf16>
    %cst_45 = arith.constant dense<0.000000e+00> : vector<24x112xf32>
    %50 = tpu.matmul %49, %32, %cst_45 {dimension_numbers = #tpu.dot_dimension_numbers<[1], [0], [0], [1], [0, 0, 1, 1], [], []>} : vector<24x56xbf16>, vector<56x112xbf16>, vector<24x112xf32> -> vector<24x112xf32>
    %51 = arith.truncf %50 : vector<24x112xf32> to vector<24x112xbf16>
    %c2_46 = arith.constant 2 : index
    %c0_47 = arith.constant 0 : index
    %c0_48 = arith.constant 0 : index
    %52 = vector.load %arg5[%c2_46, %c0_47, %c0_48] : memref<3x112x96xbf16, #tpu.memory_space<vmem>>, vector<1x112x96xbf16>
    %53 = vector.shape_cast %52 : vector<1x112x96xbf16> to vector<112x96xbf16>
    %cst_49 = arith.constant dense<0.000000e+00> : vector<24x96xf32>
    %54 = tpu.matmul %51, %53, %cst_49 {dimension_numbers = #tpu.dot_dimension_numbers<[1], [0], [0], [1], [0, 0, 1, 1], [], []>} : vector<24x112xbf16>, vector<112x96xbf16>, vector<24x96xf32> -> vector<24x96xf32>
    %55 = arith.addf %47, %54 : vector<24x96xf32>
    %c0_50 = arith.constant 0 : index
    %c0_51 = arith.constant 0 : index
    %56 = vector.load %arg6[%c0_50, %c0_51] : memref<1x96xf32, #tpu.memory_space<vmem>>, vector<1x96xf32>
    %57 = vector.broadcast %56 : vector<1x96xf32> to vector<24x96xf32>
    %58 = arith.addf %55, %57 : vector<24x96xf32>
    %cst_52 = arith.constant 0.000000e+00 : f32
    %59 = vector.broadcast %cst_52 : f32 to vector<24x96xf32>
    %60 = arith.cmpf ogt, %58, %59 : vector<24x96xf32>
    %cst_53 = arith.constant 0.00999999977 : f32
    %61 = vector.broadcast %cst_53 : f32 to vector<24x96xf32>
    %62 = arith.mulf %61, %58 : vector<24x96xf32>
    %63 = arith.select %60, %58, %62 : vector<24x96xi1>, vector<24x96xf32>
    %64 = arith.truncf %63 : vector<24x96xf32> to vector<24x96xbf16>
    %c0_54 = arith.constant 0 : index
    %c0_55 = arith.constant 0 : index
    %c0_56 = arith.constant 0 : index
    %65 = vector.load %arg7[%c0_54, %c0_55, %c0_56] : memref<3x8x24xbf16, #tpu.memory_space<vmem>>, vector<1x8x24xbf16>
    %66 = vector.shape_cast %65 : vector<1x8x24xbf16> to vector<8x24xbf16>
    %cst_57 = arith.constant dense<0.000000e+00> : vector<8x96xf32>
    %67 = tpu.matmul %66, %64, %cst_57 {dimension_numbers = #tpu.dot_dimension_numbers<[1], [0], [0], [1], [0, 0, 1, 1], [], []>} : vector<8x24xbf16>, vector<24x96xbf16>, vector<8x96xf32> -> vector<8x96xf32>
    %68 = arith.truncf %67 : vector<8x96xf32> to vector<8x96xbf16>
    %c0_58 = arith.constant 0 : index
    %c0_59 = arith.constant 0 : index
    %c0_60 = arith.constant 0 : index
    %69 = vector.load %arg8[%c0_58, %c0_59, %c0_60] : memref<3x96x32xbf16, #tpu.memory_space<vmem>>, vector<1x96x32xbf16>
    %70 = vector.shape_cast %69 : vector<1x96x32xbf16> to vector<96x32xbf16>
    %cst_61 = arith.constant dense<0.000000e+00> : vector<8x32xf32>
    %71 = tpu.matmul %68, %70, %cst_61 {dimension_numbers = #tpu.dot_dimension_numbers<[1], [0], [0], [1], [0, 0, 1, 1], [], []>} : vector<8x96xbf16>, vector<96x32xbf16>, vector<8x32xf32> -> vector<8x32xf32>
    %c1_62 = arith.constant 1 : index
    %c0_63 = arith.constant 0 : index
    %c0_64 = arith.constant 0 : index
    %72 = vector.load %arg7[%c1_62, %c0_63, %c0_64] : memref<3x8x24xbf16, #tpu.memory_space<vmem>>, vector<1x8x24xbf16>
    %73 = vector.shape_cast %72 : vector<1x8x24xbf16> to vector<8x24xbf16>
    %cst_65 = arith.constant dense<0.000000e+00> : vector<8x96xf32>
    %74 = tpu.matmul %73, %64, %cst_65 {dimension_numbers = #tpu.dot_dimension_numbers<[1], [0], [0], [1], [0, 0, 1, 1], [], []>} : vector<8x24xbf16>, vector<24x96xbf16>, vector<8x96xf32> -> vector<8x96xf32>
    %75 = arith.truncf %74 : vector<8x96xf32> to vector<8x96xbf16>
    %c1_66 = arith.constant 1 : index
    %c0_67 = arith.constant 0 : index
    %c0_68 = arith.constant 0 : index
    %76 = vector.load %arg8[%c1_66, %c0_67, %c0_68] : memref<3x96x32xbf16, #tpu.memory_space<vmem>>, vector<1x96x32xbf16>
    %77 = vector.shape_cast %76 : vector<1x96x32xbf16> to vector<96x32xbf16>
    %cst_69 = arith.constant dense<0.000000e+00> : vector<8x32xf32>
    %78 = tpu.matmul %75, %77, %cst_69 {dimension_numbers = #tpu.dot_dimension_numbers<[1], [0], [0], [1], [0, 0, 1, 1], [], []>} : vector<8x96xbf16>, vector<96x32xbf16>, vector<8x32xf32> -> vector<8x32xf32>
    %79 = arith.addf %71, %78 : vector<8x32xf32>
    %c2_70 = arith.constant 2 : index
    %c0_71 = arith.constant 0 : index
    %c0_72 = arith.constant 0 : index
    %80 = vector.load %arg7[%c2_70, %c0_71, %c0_72] : memref<3x8x24xbf16, #tpu.memory_space<vmem>>, vector<1x8x24xbf16>
    %81 = vector.shape_cast %80 : vector<1x8x24xbf16> to vector<8x24xbf16>
    %cst_73 = arith.constant dense<0.000000e+00> : vector<8x96xf32>
    %82 = tpu.matmul %81, %64, %cst_73 {dimension_numbers = #tpu.dot_dimension_numbers<[1], [0], [0], [1], [0, 0, 1, 1], [], []>} : vector<8x24xbf16>, vector<24x96xbf16>, vector<8x96xf32> -> vector<8x96xf32>
    %83 = arith.truncf %82 : vector<8x96xf32> to vector<8x96xbf16>
    %c2_74 = arith.constant 2 : index
    %c0_75 = arith.constant 0 : index
    %c0_76 = arith.constant 0 : index
    %84 = vector.load %arg8[%c2_74, %c0_75, %c0_76] : memref<3x96x32xbf16, #tpu.memory_space<vmem>>, vector<1x96x32xbf16>
    %85 = vector.shape_cast %84 : vector<1x96x32xbf16> to vector<96x32xbf16>
    %cst_77 = arith.constant dense<0.000000e+00> : vector<8x32xf32>
    %86 = tpu.matmul %83, %85, %cst_77 {dimension_numbers = #tpu.dot_dimension_numbers<[1], [0], [0], [1], [0, 0, 1, 1], [], []>} : vector<8x96xbf16>, vector<96x32xbf16>, vector<8x32xf32> -> vector<8x32xf32>
    %87 = arith.addf %79, %86 : vector<8x32xf32>
    %c0_78 = arith.constant 0 : index
    %c0_79 = arith.constant 0 : index
    %88 = vector.load %arg9[%c0_78, %c0_79] : memref<1x32xf32, #tpu.memory_space<vmem>>, vector<1x32xf32>
    %89 = vector.broadcast %88 : vector<1x32xf32> to vector<8x32xf32>
    %90 = arith.addf %87, %89 : vector<8x32xf32>
    %cst_80 = arith.constant 0.000000e+00 : f32
    %91 = vector.broadcast %cst_80 : f32 to vector<8x32xf32>
    %92 = arith.cmpf ogt, %90, %91 : vector<8x32xf32>
    %cst_81 = arith.constant 0.00999999977 : f32
    %93 = vector.broadcast %cst_81 : f32 to vector<8x32xf32>
    %94 = arith.mulf %93, %90 : vector<8x32xf32>
    %95 = arith.select %92, %90, %94 : vector<8x32xi1>, vector<8x32xf32>
    %96 = arith.truncf %95 : vector<8x32xf32> to vector<8x32xbf16>
    %c0_82 = arith.constant 0 : index
    %c0_83 = arith.constant 0 : index
    %c0_84 = arith.constant 0 : index
    %97 = vector.load %arg10[%c0_82, %c0_83, %c0_84] : memref<1x8x8xbf16, #tpu.memory_space<vmem>>, vector<1x8x8xbf16>
    %98 = vector.shape_cast %97 : vector<1x8x8xbf16> to vector<8x8xbf16>
    %cst_85 = arith.constant dense<0.000000e+00> : vector<8x32xf32>
    %99 = tpu.matmul %98, %96, %cst_85 {dimension_numbers = #tpu.dot_dimension_numbers<[1], [0], [0], [1], [0, 0, 1, 1], [], []>} : vector<8x8xbf16>, vector<8x32xbf16>, vector<8x32xf32> -> vector<8x32xf32>
    %100 = arith.truncf %99 : vector<8x32xf32> to vector<8x32xbf16>
    %c0_86 = arith.constant 0 : index
    %c0_87 = arith.constant 0 : index
    %c0_88 = arith.constant 0 : index
    %101 = vector.load %arg11[%c0_86, %c0_87, %c0_88] : memref<1x32x512xbf16, #tpu.memory_space<vmem>>, vector<1x32x512xbf16>
    %102 = vector.shape_cast %101 : vector<1x32x512xbf16> to vector<32x512xbf16>
    %cst_89 = arith.constant dense<0.000000e+00> : vector<8x512xf32>
    %103 = tpu.matmul %100, %102, %cst_89 {dimension_numbers = #tpu.dot_dimension_numbers<[1], [0], [0], [1], [0, 0, 1, 1], [], []>} : vector<8x32xbf16>, vector<32x512xbf16>, vector<8x512xf32> -> vector<8x512xf32>
    %c0_90 = arith.constant 0 : index
    %c0_91 = arith.constant 0 : index
    %104 = vector.load %arg12[%c0_90, %c0_91] : memref<1x512xf32, #tpu.memory_space<vmem>>, vector<1x512xf32>
    %105 = vector.broadcast %104 : vector<1x512xf32> to vector<8x512xf32>
    %106 = arith.addf %103, %105 : vector<8x512xf32>
    %cst_92 = arith.constant 0.000000e+00 : f32
    %107 = vector.broadcast %cst_92 : f32 to vector<8x512xf32>
    %108 = arith.cmpf ogt, %106, %107 : vector<8x512xf32>
    %cst_93 = arith.constant 0.00999999977 : f32
    %109 = vector.broadcast %cst_93 : f32 to vector<8x512xf32>
    %110 = arith.mulf %109, %106 : vector<8x512xf32>
    %111 = arith.select %108, %106, %110 : vector<8x512xi1>, vector<8x512xf32>
    %112 = arith.truncf %111 : vector<8x512xf32> to vector<8x512xbf16>
    %c0_94 = arith.constant 0 : index
    %c0_95 = arith.constant 0 : index
    %113 = vector.load %arg13[%c0_94, %c0_95] : memref<512x256xbf16, #tpu.memory_space<vmem>>, vector<512x256xbf16>
    %cst_96 = arith.constant dense<0.000000e+00> : vector<8x256xf32>
    %114 = tpu.matmul %112, %113, %cst_96 {dimension_numbers = #tpu.dot_dimension_numbers<[1], [0], [0], [1], [0, 0, 1, 1], [], []>} : vector<8x512xbf16>, vector<512x256xbf16>, vector<8x256xf32> -> vector<8x256xf32>
    %c0_97 = arith.constant 0 : index
    %c0_98 = arith.constant 0 : index
    %115 = vector.load %arg14[%c0_97, %c0_98] : memref<1x256xf32, #tpu.memory_space<vmem>>, vector<1x256xf32>
    %116 = vector.broadcast %115 : vector<1x256xf32> to vector<8x256xf32>
    %117 = arith.addf %114, %116 : vector<8x256xf32>
    %cst_99 = arith.constant 0.000000e+00 : f32
    %118 = vector.broadcast %cst_99 : f32 to vector<8x256xf32>
    %119 = arith.cmpf ogt, %117, %118 : vector<8x256xf32>
    %cst_100 = arith.constant 0.00999999977 : f32
    %120 = vector.broadcast %cst_100 : f32 to vector<8x256xf32>
    %121 = arith.mulf %120, %117 : vector<8x256xf32>
    %122 = arith.select %119, %117, %121 : vector<8x256xi1>, vector<8x256xf32>
    %123 = arith.truncf %122 : vector<8x256xf32> to vector<8x256xbf16>
    %c0_101 = arith.constant 0 : index
    %c0_102 = arith.constant 0 : index
    %124 = vector.load %arg15[%c0_101, %c0_102] : memref<256x128xbf16, #tpu.memory_space<vmem>>, vector<256x128xbf16>
    %cst_103 = arith.constant dense<0.000000e+00> : vector<8x128xf32>
    %125 = tpu.matmul %123, %124, %cst_103 {dimension_numbers = #tpu.dot_dimension_numbers<[1], [0], [0], [1], [0, 0, 1, 1], [], []>} : vector<8x256xbf16>, vector<256x128xbf16>, vector<8x128xf32> -> vector<8x128xf32>
    %c0_104 = arith.constant 0 : index
    %c0_105 = arith.constant 0 : index
    %126 = vector.load %arg16[%c0_104, %c0_105] : memref<1x128xf32, #tpu.memory_space<vmem>>, vector<1x128xf32>
    %127 = vector.broadcast %126 : vector<1x128xf32> to vector<8x128xf32>
    %128 = arith.addf %125, %127 : vector<8x128xf32>
    %c0_106 = arith.constant 0 : index
    %c0_107 = arith.constant 0 : index
    %129 = vector.load %arg17[%c0_106, %c0_107] : memref<8x128xf32, #tpu.memory_space<vmem>>, vector<8x128xf32>
    tpu.vector_store %arg17[%c0_106, %c0_107], %128 {strides = array<i32>} : memref<8x128xf32, #tpu.memory_space<vmem>>, vector<8x128xf32>,
    return
  }
}

</mosaic_0001>

<bundles_post_ra>
// kernel: forward.1
= control target key start
LH: loop header
LB: loop body
LE: loop exit
PB: predicated region body
PF: predicated region fallthrough
CT: control target
= control target key end

     0   :  { %s4660_s0 = inlined_call_operand.vmem [shape: bf16[128,64], index: 0, kind: input, shape index: {}]   ;;  %s4661_s1 = inlined_call_operand.vmem [shape: bf16[3,56,128], index: 1, kind: input, shape index: {}]   ;;  %s4662_s2 = inlined_call_operand.vmem [shape: bf16[3,64,112], index: 2, kind: input, shape index: {}]   ;;  %s4663_s3 = inlined_call_operand.hbm [shape: f32[1,112], index: 3, kind: input, shape index: {}]   ;;  %s4664_s4 = inlined_call_operand.vmem [shape: bf16[3,24,56], index: 4, kind: input, shape index: {}]   ;;  %s4665_s5 = inlined_call_operand.vmem [shape: bf16[3,112,96], index: 5, kind: input, shape index: {}]   ;;  %s4666_s6 = inlined_call_operand.hbm [shape: f32[1,96], index: 6, kind: input, shape index: {}]   ;;  %s4667_s7 = inlined_call_operand.vmem [shape: bf16[3,8,24], index: 7, kind: input, shape index: {}]   ;;  %s4668_s8 = inlined_call_operand.vmem [shape: bf16[3,96,32], index: 8, kind: input, shape index: {}]   ;;  %s4669_s9 = inlined_call_operand.hbm [shape: f32[1,32], index: 9, kind: input, shape index: {}]   ;;  %s4670_s10 = inlined_call_operand.hbm [shape: bf16[1,8,8], index: 10, kind: input, shape index: {}]   ;;  %s4671_s11 = inlined_call_operand.hbm [shape: bf16[1,32,512], index: 11, kind: input, shape index: {}]   ;;  %s4672_s12 = inlined_call_operand.hbm [shape: f32[1,512], index: 12, kind: input, shape index: {}]   ;;  %s4673_s13 = inlined_call_operand.vmem [shape: bf16[512,256], index: 13, kind: input, shape index: {}]   ;;  %s4674_s14 = inlined_call_operand.vmem [shape: f32[1,256], index: 14, kind: input, shape index: {}]   ;;  %s4675_s15 = inlined_call_operand.vmem [shape: bf16[256,128], index: 15, kind: input, shape index: {}]   ;;  %s4676_s16 = inlined_call_operand.hbm [shape: f32[1,128], index: 16, kind: input, shape index: {}]   ;;  %s4677_s17 = inlined_call_operand.vmem [shape: f32[8,128], index: 17, kind: output, shape index: {}]  }
   0x1   :  { %4680 = sst [smem:[#allocation17_spill]] %s4660_s0 }
   0x2   :  { %4681 = sst [smem:[#allocation18_spill]] %s4661_s1 }
   0x3   :  { %22 = vsyncpa [#allocation3], 0 }
   0x4   :  { %23 = vsyncpa [#allocation5], 0 }
   0x5   :  { %24 = vsyncpa [#allocation8], 0 }
   0x6   :  { %25 = vsyncpa [#allocation11], 0  ;;  %s3859_s24 = smov [#allocation4]   ;;  %s3860_s26 = smov [#allocation7]  }
   0x7   :  { %s52_s25 = sshll.u32 %s3859_s24, 4  ;;  %s76_s27 = sshll.u32 %s3860_s26, 4  ;;  %s53_s25 = int_to_ptr.vmem [resolvable:$true] %s52_s25  ;;  %s77_s27 = int_to_ptr.vmem [resolvable:$true] %s76_s27 }
   0x8   :  { %s3719_s28 = scalar_lea.vmem %s53_s25, 16  ;;  %s3723_s29 = scalar_lea.vmem %s53_s25, 32 }
   0x9   :  { %p3720_p0 = scmp.ne.s32.totalorder %s53_s25, %s3719_s28  ;;  %p3724_p1 = scmp.lt.s32.totalorder %s53_s25, %s53_s25 }
   0xa   :  { %p3725_p2 = scmp.lt.s32.totalorder %s3723_s29, %s3719_s28 }
   0xc   :  { %p3726_p3 = por %p3725_p2, %p3724_p1 }
   0xe   :  { %p3727_p4 = pnand %p3726_p3, %p3720_p0 }
  0x10   :  { %3730 = shalt.err (!%p3727_p4)
}
  0x11   :  { %55 = dma.hbm_to_vmem [thread:$0]  %s4666_s6, 16, %s53_s25, [#allocation5]  }
  0x12   :  { %s3739_s18 = scalar_lea.vmem %s77_s27, 64  ;;  %p3744_p6 = scmp.lt.s32.totalorder %s77_s27, %s77_s27 }
  0x13   :  { %p3740_p5 = scmp.ne.s32.totalorder %s77_s27, %s3739_s18  ;;  %p3745_p7 = scmp.lt.s32.totalorder %s3739_s18, %s3739_s18 }
  0x15   :  { %p3746_p8 = por %p3745_p7, %p3744_p6 }
  0x17   :  { %p3747_p9 = pnand %p3746_p8, %p3740_p5 }
  0x19   :  { %3750 = shalt.err (!%p3747_p9)
}
  0x1a   :  { %79 = dma.hbm_to_vmem [thread:$0]  %s4670_s10, 64, %s77_s27, [#allocation8]  }
  0x1b   :  { %s3861_s20 = smov [#allocation10]   ;;  %s3862_s22 = smov [#allocation2]  }
  0x1c   :  { %s98_s21 = sshll.u32 %s3861_s20, 4  ;;  %s38_s23 = sshll.u32 %s3862_s22, 4  ;;  %s99_s21 = int_to_ptr.vmem [resolvable:$true] %s98_s21  ;;  %s39_s23 = int_to_ptr.vmem [resolvable:$true] %s38_s23 }
  0x1d   :  { %s3759_s24 = scalar_lea.vmem %s99_s21, 64  ;;  %p3764_p11 = scmp.lt.s32.totalorder %s99_s21, %s99_s21 }
  0x1e   :  { %p3760_p10 = scmp.ne.s32.totalorder %s99_s21, %s3759_s24  ;;  %p3765_p12 = scmp.lt.s32.totalorder %s3759_s24, %s3759_s24 }
  0x20   :  { %p3766_p13 = por %p3765_p12, %p3764_p11 }
  0x22   :  { %p3767_p0 = pnand %p3766_p13, %p3760_p10 }
  0x24   :  { %3770 = shalt.err (!%p3767_p0)
}
  0x25   :  { %101 = dma.hbm_to_vmem [thread:$0]  %s4672_s12, 64, %s99_s21, [#allocation11]  }
  0x26   :  { %s3779_s26 = scalar_lea.vmem %s39_s23, 16  ;;  %s3783_s10 = scalar_lea.vmem %s39_s23, 32 }
  0x27   :  { %p3780_p1 = scmp.ne.s32.totalorder %s39_s23, %s3779_s26  ;;  %p3784_p2 = scmp.lt.s32.totalorder %s39_s23, %s39_s23 }
  0x28   :  { %p3785_p3 = scmp.lt.s32.totalorder %s3783_s10, %s3779_s26 }
  0x2a   :  { %p3786_p4 = por %p3785_p3, %p3784_p2 }
  0x2c   :  { %p3787_p5 = pnand %p3786_p4, %p3780_p1 }
  0x2e   :  { %3790 = shalt.err (!%p3787_p5)
}
  0x2f   :  { %41 = dma.hbm_to_vmem [thread:$0]  %s4663_s3, 16, %s39_s23, [#allocation3]  }
  0x30   :  { %s3863_s29 = smov [#allocation6]   ;;  %s3864_s30 = smov [#allocation9]  }
  0x31   :  { %s66_s0 = sshll.u32 %s3863_s29, 4  ;;  %s85_s18 = sshll.u32 %s3864_s30, 4  ;;  %s67_s0 = int_to_ptr.vmem [resolvable:$true] %s66_s0  ;;  %s86_s18 = int_to_ptr.vmem [resolvable:$true] %s85_s18 }
  0x32   :  { %s3799_s19 = scalar_lea.vmem %s67_s0, 16  ;;  %s3803_s12 = scalar_lea.vmem %s67_s0, 32 }
  0x33   :  { %p3800_p6 = scmp.ne.s32.totalorder %s67_s0, %s3799_s19  ;;  %p3804_p7 = scmp.lt.s32.totalorder %s67_s0, %s67_s0 }
  0x34   :  { %p3805_p8 = scmp.lt.s32.totalorder %s3803_s12, %s3799_s19 }
  0x36   :  { %p3806_p9 = por %p3805_p8, %p3804_p7 }
  0x38   :  { %p3807_p10 = pnand %p3806_p9, %p3800_p6 }
  0x3a   :  { %3810 = shalt.err (!%p3807_p10)
}
  0x3b   :  { %69 = dma.hbm_to_vmem [thread:$0]  %s4669_s9, 16, %s67_s0, [#allocation5]  }
  0x3c   :  { %s3819_s21 = scalar_lea.vmem %s86_s18, 1024  ;;  %p3824_p12 = scmp.lt.s32.totalorder %s86_s18, %s86_s18 }
  0x3d   :  { %p3820_p11 = scmp.ne.s32.totalorder %s86_s18, %s3819_s21  ;;  %p3825_p13 = scmp.lt.s32.totalorder %s3819_s21, %s3819_s21 }
  0x3f   :  { %p3826_p0 = por %p3825_p13, %p3824_p12 }
  0x41   :  { %p3827_p1 = pnand %p3826_p0, %p3820_p11 }
  0x43   :  { %3830 = shalt.err (!%p3827_p1)
}
  0x44   :  { %s3865_s3 = smov 256   ;;  %s3866_s22 = smov 16  }
  0x45   :  { %91 = dma.hbm_to_vmem [thread:$0]  %s4671_s11, 1024, %s86_s18, [#allocation8], %s3865_s3, %s3865_s3, %s3866_s22  }
  0x46   :  { %s3867_s6 = smov [#allocation12]  }
  0x47   :  { %s114_s25 = sshll.u32 %s3867_s6, 4  ;;  %s115_s25 = int_to_ptr.vmem [resolvable:$true] %s114_s25 }
  0x48   :  { %s3839_s26 = scalar_lea.vmem %s115_s25, 16  ;;  %s3843_s10 = scalar_lea.vmem %s115_s25, 32 }
  0x49   :  { %p3840_p2 = scmp.ne.s32.totalorder %s115_s25, %s3839_s26  ;;  %p3844_p3 = scmp.lt.s32.totalorder %s115_s25, %s115_s25 }
  0x4a   :  { %p3845_p4 = scmp.lt.s32.totalorder %s3843_s10, %s3839_s26 }
  0x4c   :  { %p3846_p5 = por %p3845_p4, %p3844_p3 }
  0x4e   :  { %p3847_p6 = pnand %p3846_p5, %p3840_p2 }
  0x50   :  { %3850 = shalt.err (!%p3847_p6)
}
  0x51   :  { %117 = dma.hbm_to_vmem [thread:$0]  %s4676_s16, 16, %s115_s25, [#allocation11]  }
  0x52   :  { %3851 = dma.done.wait [#allocation3], 16  }
  0x53   :  { %3852 = vsyncadd [#allocation3], 4294967280 }
  0x54   :  { %3853 = dma.done.wait [#allocation5], 32  }
  0x55   :  { %3854 = vsyncadd [#allocation5], 4294967264 }
  0x56   :  { %3855 = dma.done.wait [#allocation8], 1088  }
  0x57   :  { %3856 = vsyncadd [#allocation8], 4294966208 }
  0x58   :  { %3857 = dma.done.wait [#allocation11], 80  }
  0x59   :  { %3858 = vsyncadd [#allocation11], 4294967216  ;;  %s4682_s29 = sld [smem:[#allocation17_spill]]  ;;  %v3526_v10 = vld [vmem:[%s4662_s2 + $0x38] sm:$0xff]   ;;  %v3527_v15 = vld [vmem:[%s4662_s2 + $0x30] sm:$0xff]   ;;  %vm440_vm0 = vcmask 523264  }
  0x5a   :  { %s4683_s21 = sld [smem:[#allocation18_spill]]  ;;  %v3528_v18 = vld [vmem:[%s4662_s2 + $0x28] sm:$0xff]   ;;  %v3529_v19 = vld [vmem:[%s4662_s2 + $0x20] sm:$0xff]   ;;  %v3530_v20 = vld [vmem:[%s4662_s2 + $0x18] sm:$0xff]   ;;  %vm881_vm1 = vcmask 457728   ;;  %vm888_vm7 = vcmask 1043456  }
  0x5b   :  { %v3531_v32 = vld [vmem:[%s4662_s2 + $0x10] sm:$0xff]   ;;  %v3532_v37 = vld [vmem:[%s4662_s2 + $0x8] sm:$0xff]   ;;  %v3533_v43 = vld [vmem:[%s4662_s2] sm:$0xff]   ;;  %vm1081_vm10 = vcmask 916480   ;;  %vm3869_vm11 = vmmov 0   ;;  %vm1436_vm15 = vcmask 195584  }
  0x5c   :  { %v3538_v52 = vld [vmem:[%s4662_s2 + $0x58] sm:$0xff]   ;;  %v3539_v53 = vld [vmem:[%s4662_s2 + $0x50] sm:$0xff]   ;;  %v3540_v54 = vld [vmem:[%s4662_s2 + $0x48] sm:$0xff]  }
  0x5d   :  { %v3541_v55 = vld [vmem:[%s4662_s2 + $0x40] sm:$0xff]  }
  0x5f   :  { %v3985_v0 = vld [vmem:[%s4682_s29 + $0x38] sm:$0xff]   ;;  %v3990_v1 = vld [vmem:[%s4682_s29 + $0x30] sm:$0xff]   ;;  %v4000_v2 = vld [vmem:[%s4682_s29 + $0x28] sm:$0xff]  }
  0x60   :  { %3231 = vmatprep.subr.bf16.mxu1 %v3985_v0  ;;  %3207 = vmatprep.subr.bf16.mxu0 %v3985_v0  ;;  %v4007_v3 = vld [vmem:[%s4682_s29 + $0x20] sm:$0xff]   ;;  %v4019_v5 = vld [vmem:[%s4682_s29 + $0x18] sm:$0xff]   ;;  %v4033_v7 = vld [vmem:[%s4682_s29 + $0x10] sm:$0xff]  }
  0x61   :  { %3232 = vmatpush3.bf16.msra.mxu1 %v3985_v0  ;;  %3208 = vmatpush3.bf16.msra.mxu0 %v3985_v0  ;;  %v3518_v4 = vld [vmem:[%s4683_s21 + $0x1c] sm:$0xff]   ;;  %v4039_v8 = vld [vmem:[%s4682_s29 + $0x8] sm:$0xff]   ;;  %v3524_v14 = vld [vmem:[%s4683_s21 + $0x10] sm:$0xff]  }
  0x62   :  { %3233 = vmatprep.subr.bf16.mxu1 %v3990_v1  ;;  %3209 = vmatprep.subr.bf16.mxu0 %v3990_v1  ;;  %v3522_v6 = vld [vmem:[%s4683_s21] sm:$0xff]   ;;  %v3523_v12 = vld [vmem:[%s4683_s21 + $0x8] sm:$0xff]   ;;  %v3521_v16 = vld [vmem:[%s4683_s21 + $0x34] ss:$0 sps:$4 sm:$0xff]  }
  0x63   :  { %3247 = vmatprep.mubr.bf16.mxu1 %v3518_v4  ;;  %3223 = vmatprep.mubr.bf16.mxu0 %v3522_v6  ;;  %v4048_v9 = vld [vmem:[%s4682_s29] sm:$0xff]   ;;  %v3520_v13 = vld [vmem:[%s4683_s21 + $0x2c] sm:$0xff]   ;;  %v3525_v17 = vld [vmem:[%s4683_s21 + $0x18] ss:$0 sps:$4 sm:$0xff]  }
  0x64   :  { %v3519_v11 = vld [vmem:[%s4683_s21 + $0x24] sm:$0xff]   ;;  %v3534_v48 = vld [vmem:[%s4683_s21 + $0x38] sm:$0xff]   ;;  %v3537_v51 = vld [vmem:[%s4683_s21 + $0x50] ss:$0 sps:$4 sm:$0xff]  }
  0x65   :  { %3234 = vmatpush3.bf16.msra.mxu1 %v3990_v1  ;;  %3210 = vmatpush3.bf16.msra.mxu0 %v3990_v1  ;;  %v3535_v49 = vld [vmem:[%s4683_s21 + $0x40] sm:$0xff]   ;;  %v3536_v50 = vld [vmem:[%s4683_s21 + $0x48] sm:$0xff]  }
  0x66   :  { %3235 = vmatprep.subr.bf16.mxu1 %v4000_v2  ;;  %3211 = vmatprep.subr.bf16.mxu0 %v4000_v2 }
  0x69   :  { %3236 = vmatpush3.bf16.msra.mxu1 %v4000_v2  ;;  %3212 = vmatpush3.bf16.msra.mxu0 %v4000_v2 }
  0x6a   :  { %3237 = vmatprep.subr.bf16.mxu1 %v4007_v3  ;;  %3213 = vmatprep.subr.bf16.mxu0 %v4007_v3 }
  0x6d   :  { %3238 = vmatpush3.bf16.msra.mxu1 %v4007_v3  ;;  %3214 = vmatpush3.bf16.msra.mxu0 %v4007_v3 }
  0x6e   :  { %3239 = vmatprep.subr.bf16.mxu1 %v4019_v5  ;;  %3215 = vmatprep.subr.bf16.mxu0 %v4019_v5 }
  0x71   :  { %3240 = vmatpush3.bf16.msra.mxu1 %v4019_v5  ;;  %3216 = vmatpush3.bf16.msra.mxu0 %v4019_v5 }
  0x72   :  { %3241 = vmatprep.subr.bf16.mxu1 %v4033_v7  ;;  %3217 = vmatprep.subr.bf16.mxu0 %v4033_v7 }
  0x75   :  { %3242 = vmatpush3.bf16.msra.mxu1 %v4033_v7  ;;  %3218 = vmatpush3.bf16.msra.mxu0 %v4033_v7 }
  0x76   :  { %3243 = vmatprep.subr.bf16.mxu1 %v4039_v8  ;;  %3219 = vmatprep.subr.bf16.mxu0 %v4039_v8 }
  0x79   :  { %3244 = vmatpush3.bf16.msra.mxu1 %v4039_v8  ;;  %3220 = vmatpush3.bf16.msra.mxu0 %v4039_v8 }
  0x7a   :  { %3245 = vmatprep.subr.bf16.mxu1 %v4048_v9  ;;  %3221 = vmatprep.subr.bf16.mxu0 %v4048_v9 }
  0x7d   :  { %3246 = vmatpush3.bf16.msra.mxu1 %v4048_v9  ;;  %3222 = vmatpush3.bf16.msra.mxu0 %v4048_v9 }
  0x7e   :  { %3255 = vmatprep.subr.bf16.mxu0 %v3526_v10  ;;  %3311 = vmatprep.subr.bf16.mxu1 %v3538_v52 }
  0x80   :  { %3248 = vmatmul.mubr.bf16.vlgmr.msra.gmra.mxu1 %v3519_v11  ;;  %3224 = vmatmul.mubr.bf16.vlgmr.msra.gmra.mxu0 %v3523_v12 }
  0x81   :  { %3251 = vmatprep.mubr.bf16.mxu1 %v3520_v13  ;;  %3227 = vmatprep.mubr.bf16.mxu0 %v3524_v14 }
  0x82   :  { %3256 = vmatpush3.bf16.msra.mxu0 %v3526_v10  ;;  %3312 = vmatpush3.bf16.msra.mxu1 %v3538_v52 }
  0x83   :  { %3257 = vmatprep.subr.bf16.mxu0 %v3527_v15  ;;  %3313 = vmatprep.subr.bf16.mxu1 %v3539_v53 }
  0x86   :  { %3258 = vmatpush3.bf16.msra.mxu0 %v3527_v15  ;;  %3314 = vmatpush3.bf16.msra.mxu1 %v3539_v53 }
  0x87   :  { %3259 = vmatprep.subr.bf16.mxu0 %v3528_v18  ;;  %3315 = vmatprep.subr.bf16.mxu1 %v3540_v54 }
  0x88   :  { %3252 = vmatmul.mubr.bf16.gmra.mxu1 %v3521_v16  ;;  %3228 = vmatmul.mubr.bf16.gmra.mxu0 %v3525_v17 }
  0x8a   :  { %3260 = vmatpush3.bf16.msra.mxu0 %v3528_v18  ;;  %3316 = vmatpush3.bf16.msra.mxu1 %v3540_v54 }
  0x8b   :  { %3261 = vmatprep.subr.bf16.mxu0 %v3529_v19  ;;  %3317 = vmatprep.subr.bf16.mxu1 %v3541_v55 }
  0x8e   :  { %3262 = vmatpush3.bf16.msra.mxu0 %v3529_v19  ;;  %3318 = vmatpush3.bf16.msra.mxu1 %v3541_v55 }
  0x8f   :  { %3271 = vmatprep.subr.bf16.mxu0 %v3530_v20 }
 0x140   :  { %v3249_v21 = vpop.f32.mrf.mxu1  ;;  %v3225_v22 = vpop.f32.mrf.mxu0 }
 0x142   :  { %v373_v23 = vpop.f32.mrf.mxu1  ;;  %v267_v24 = vpop.f32.mrf.mxu0 }
 0x144   :  { %v3250_v25 = vpop.f32.mrf.mxu1  ;;  %v3226_v26 = vpop.f32.mrf.mxu0 }
 0x145   :  { %v404_v30 = vpack.c.bf16 %v3250_v25, %v3249_v21  ;;  %v298_v46 = vpack.c.bf16 %v3226_v26, %v3225_v22 }
 0x146   :  { %v376_v27 = vpop.f32.mrf.mxu1  ;;  %v270_v28 = vpop.f32.mrf.mxu0 }
 0x147   :  { %v403_v29 = vpack.c.bf16 %v376_v27, %v373_v23  ;;  %v297_v41 = vpack.c.bf16 %v270_v28, %v267_v24  ;;  %v3542_v27 = vld [vmem:[%s4664_s4] sm:$0xff]   ;;  %v3543_v28 = vld [vmem:[%s4664_s4 + $0xc] sm:$0xff]  }
 0x148   :  { %v3253_v31 = vpop.f32.mrf.mxu1  ;;  %v3229_v33 = vpop.f32.mrf.mxu0 }
 0x149   :  { %3263 = vmatprep.mubr.msk.bf16.mxu0 %vm440_vm0, %v403_v29  ;;  %v406_v42 = vpack.c.bf16 %v3253_v31, %v3253_v31  ;;  %v300_v47 = vpack.c.bf16 %v3229_v33, %v3229_v33 }
 0x14a   :  { %v389_v34 = vpop.f32.mrf.mxu1  ;;  %3264 = vmatmul.mubr.msk.bf16.vlgmr.msra.gmra.mxu0 %vm440_vm0, %v404_v30  ;;  %v283_v35 = vpop.f32.mrf.mxu0  ;;  %v2830_v30 = vld [vmem:[#allocation2] ss:$0 sm:$0xff] }
 0x14b   :  { %3272 = vmatpush3.bf16.msra.mxu0 %v3530_v20 }
 0x14c   :  { %v3254_v36 = vpop.f32.mrf.mxu1  ;;  %3273 = vmatprep.subr.bf16.mxu0 %v3531_v32  ;;  %v3230_v38 = vpop.f32.mrf.mxu0 }
 0x14e   :  { %v392_v39 = vpop.f32.mrf.mxu1  ;;  %v286_v44 = vpop.f32.mrf.mxu0 }
 0x14f   :  { %v405_v40 = vpack.c.bf16 %v392_v39, %v389_v34  ;;  %3274 = vmatpush3.bf16.msra.mxu0 %v3531_v32  ;;  %v299_v45 = vpack.c.bf16 %v286_v44, %v283_v35 }
 0x150   :  { %3275 = vmatprep.subr.bf16.mxu0 %v3532_v37 }
 0x151   :  { %3267 = vmatprep.mubr.msk.bf16.mxu0 %vm440_vm0, %v405_v40 }
 0x152   :  { %3268 = vmatmul.mubr.msk.bf16.gmra.mxu0 %vm440_vm0, %v406_v42 }
 0x153   :  { %3276 = vmatpush3.bf16.msra.mxu0 %v3532_v37  ;;  %3279 = vmatprep.mubr.msk.bf16.mxu0 %vm440_vm0, %v297_v41 }
 0x154   :  { %3277 = vmatprep.subr.bf16.mxu0 %v3533_v43 }
 0x157   :  { %3278 = vmatpush3.bf16.msra.mxu0 %v3533_v43 }
 0x158   :  { %3287 = vmatprep.subr.bf16.mxu0 %v3985_v0 }
 0x15a   :  { %3280 = vmatmul.mubr.msk.bf16.vlgmr.msra.gmra.mxu0 %vm440_vm0, %v298_v46 }
 0x15b   :  { %3288 = vmatpush3.bf16.msra.mxu0 %v3985_v0  ;;  %3283 = vmatprep.mubr.msk.bf16.mxu0 %vm440_vm0, %v299_v45 }
 0x15c   :  { %3289 = vmatprep.subr.bf16.mxu0 %v3990_v1 }
 0x15f   :  { %3290 = vmatpush3.bf16.msra.mxu0 %v3990_v1 }
 0x160   :  { %3291 = vmatprep.subr.bf16.mxu0 %v4000_v2 }
 0x162   :  { %3284 = vmatmul.mubr.msk.bf16.gmra.mxu0 %vm440_vm0, %v300_v47 }
 0x163   :  { %3292 = vmatpush3.bf16.msra.mxu0 %v4000_v2  ;;  %3303 = vmatprep.mubr.bf16.mxu0 %v3534_v48 }
 0x164   :  { %3293 = vmatprep.subr.bf16.mxu0 %v4007_v3 }
 0x167   :  { %3294 = vmatpush3.bf16.msra.mxu0 %v4007_v3 }
 0x168   :  { %3295 = vmatprep.subr.bf16.mxu0 %v4019_v5 }
 0x16b   :  { %3296 = vmatpush3.bf16.msra.mxu0 %v4019_v5 }
 0x16c   :  { %3297 = vmatprep.subr.bf16.mxu0 %v4033_v7 }
 0x16f   :  { %3298 = vmatpush3.bf16.msra.mxu0 %v4033_v7 }
 0x170   :  { %3299 = vmatprep.subr.bf16.mxu0 %v4039_v8 }
 0x173   :  { %3300 = vmatpush3.bf16.msra.mxu0 %v4039_v8 }
 0x174   :  { %3301 = vmatprep.subr.bf16.mxu0 %v4048_v9 }
 0x177   :  { %3302 = vmatpush3.bf16.msra.mxu0 %v4048_v9 }
 0x17a   :  { %3304 = vmatmul.mubr.bf16.vlgmr.msra.gmra.mxu0 %v3535_v49 }
 0x17b   :  { %3307 = vmatprep.mubr.bf16.mxu0 %v3536_v50 }
 0x182   :  { %3308 = vmatmul.mubr.bf16.gmra.mxu0 %v3537_v51 }
 0x183   :  { %3347 = vmatprep.mubr.msk.bf16.mxu0 %vm881_vm1, %v3543_v28 }
 0x20a   :  { %v3265_v56 = vpop.f32.mrf.mxu0 }
 0x20c   :  { %v487_v57 = vpop.f32.mrf.mxu0 }
 0x20e   :  { %v3266_v58 = vpop.f32.mrf.mxu0 }
 0x210   :  { %v490_v59 = vpop.f32.mrf.mxu0 }
 0x212   :  { %v3269_v60 = vpop.f32.mrf.mxu0 }
 0x214   :  { %v503_v61 = vpop.f32.mrf.mxu0 }
 0x216   :  { %v3270_v62 = vpop.f32.mrf.mxu0 }
 0x218   :  { %v506_v63 = vpop.f32.mrf.mxu0 }
 0x21a   :  { %v3281_v0 = vpop.f32.mrf.mxu0 }
 0x21b   :  { %v596_v1 = vadd.f32 %v3281_v0, %v3265_v56 }
 0x21c   :  { %v587_v2 = vpop.f32.mrf.mxu0 }
 0x21d   :  { %v588_v3 = vadd.f32 %v587_v2, %v487_v57 }
 0x21e   :  { %v3282_v4 = vpop.f32.mrf.mxu0 }
 0x21f   :  { %v599_v5 = vadd.f32 %v3282_v4, %v3266_v58 }
 0x220   :  { %v590_v6 = vpop.f32.mrf.mxu0 }
 0x221   :  { %v591_v7 = vadd.f32 %v590_v6, %v490_v59 }
 0x222   :  { %v3285_v8 = vpop.f32.mrf.mxu0 }
 0x223   :  { %v612_v9 = vadd.f32 %v3285_v8, %v3269_v60  ;;  %v3553_v8 = vld [vmem:[%s4665_s5 + $0x30] sm:$0xff]  }
 0x224   :  { %v603_v10 = vpop.f32.mrf.mxu0 }
 0x225   :  { %v604_v11 = vadd.f32 %v603_v10, %v503_v61  ;;  %v3545_v10 = vld [vmem:[%s4664_s4 + $0x14] ss:$0 sps:$4 sm:$0xff]  }
 0x226   :  { %v3286_v12 = vpop.f32.mrf.mxu0 }
 0x227   :  { %v3554_v12 = vld [vmem:[%s4665_s5 + $0x28] sm:$0xff]  }
 0x228   :  { %v606_v13 = vpop.f32.mrf.mxu0 }
 0x229   :  { %v607_v14 = vadd.f32 %v606_v13, %v506_v63  ;;  %v3548_v13 = vld [vmem:[%s4665_s5 + $0x58] sm:$0xff]  }
 0x23a   :  { %v3305_v15 = vpop.f32.mrf.mxu0 }
 0x23c   :  { %v681_v16 = vpop.f32.mrf.mxu0 }
 0x23e   :  { %v3306_v17 = vpop.f32.mrf.mxu0 }
 0x23f   :  { %v712_v20 = vpack.c.bf16 %v3306_v17, %v3305_v15  ;;  %v3549_v15 = vld [vmem:[%s4665_s5 + $0x50] sm:$0xff]   ;;  %v3550_v17 = vld [vmem:[%s4665_s5 + $0x48] sm:$0xff]  }
 0x240   :  { %v684_v18 = vpop.f32.mrf.mxu0 }
 0x241   :  { %v711_v19 = vpack.c.bf16 %v684_v18, %v681_v16  ;;  %v3556_v16 = vld [vmem:[%s4665_s5 + $0x18] sm:$0xff]   ;;  %v3557_v18 = vld [vmem:[%s4665_s5 + $0x10] sm:$0xff]  }
 0x242   :  { %v3309_v21 = vpop.f32.mrf.mxu0 }
 0x243   :  { %3319 = vmatprep.mubr.msk.bf16.mxu1 %vm440_vm0, %v711_v19  ;;  %v714_v26 = vpack.c.bf16 %v3309_v21, %v3309_v21  ;;  %v3551_v19 = vld [vmem:[%s4665_s5 + $0x40] sm:$0xff]   ;;  %v3558_v21 = vld [vmem:[%s4665_s5 + $0x8] sm:$0xff]  }
 0x244   :  { %v697_v22 = vpop.f32.mrf.mxu0  ;;  %3320 = vmatmul.mubr.msk.bf16.vlgmr.msra.gmra.mxu1 %vm440_vm0, %v712_v20  ;;  %v3552_v20 = vld [vmem:[%s4665_s5 + $0x38] sm:$0xff]  }
 0x246   :  { %v3310_v23 = vpop.f32.mrf.mxu0 }
 0x247   :  { %v3562_v23 = vld [vmem:[%s4665_s5 + $0xa0] sm:$0xff]  }
 0x248   :  { %v700_v24 = vpop.f32.mrf.mxu0 }
 0x249   :  { %v713_v25 = vpack.c.bf16 %v700_v24, %v697_v22  ;;  %v3559_v22 = vld [vmem:[%s4665_s5] sm:$0xff]  }
 0x24b   :  { %3323 = vmatprep.mubr.msk.bf16.mxu1 %vm440_vm0, %v713_v25 }
 0x24c   :  { %3324 = vmatmul.mubr.msk.bf16.gmra.mxu1 %vm440_vm0, %v714_v26  ;;  %vm1591_vm0 = vcmask 785408  }
 0x24d   :  { %3335 = vmatprep.mubr.msk.bf16.mxu1 %vm881_vm1, %v3542_v27 }
 0x304   :  { %v3321_v29 = vpop.f32.mrf.mxu1 }
 0x305   :  { %v826_v31 = vadd.f32 %v3321_v29, %v596_v1 }
 0x306   :  { %v794_v32 = vpop.f32.mrf.mxu1 }
 0x307   :  { %v840_v33 = vadd.f32 %v2830_v30, %v826_v31  ;;  %v824_v34 = vadd.f32 %v794_v32, %v588_v3 }
 0x308   :  { %v3322_v35 = vpop.f32.mrf.mxu1 }
 0x309   :  { %v827_v36 = vadd.f32 %v3322_v35, %v599_v5  ;;  %v854_v37 = vmul.f32 0.01, %v840_v33  ;;  %v838_v38 = vadd.f32 %v2830_v30, %v824_v34  ;;  %vm847_vm2 = vcmp.gt.f32.partialorder %v840_v33, 0.0  ;;  %v3560_v35 = vld [vmem:[%s4664_s4 + $0x18] sm:$0xff]  }
 0x30a   :  { %v797_v39 = vpop.f32.mrf.mxu1 }
 0x30b   :  { %v841_v40 = vadd.f32 %v2830_v30, %v827_v36  ;;  %v825_v41 = vadd.f32 %v797_v39, %v591_v7  ;;  %v861_v45 = vsel %vm847_vm2, %v840_v33, %v854_v37  ;;  %v852_v46 = vmul.f32 0.01, %v838_v38  ;;  %v3546_v7 = vld [vmem:[%s4665_s5 + $0x68] sm:$0xff]   ;;  %v3561_v37 = vld [vmem:[%s4664_s4 + $0x20] ss:$0 sps:$4 sm:$0xff]   ;;  %v3564_v39 = vld [vmem:[%s4665_s5 + $0x90] sm:$0xff]  }
 0x30c   :  { %v3325_v42 = vpop.f32.mrf.mxu1  ;;  %vm845_vm4 = vcmp.gt.f32.partialorder %v838_v38, 0.0  ;;  %vm1866_vm2 = vcmask 64512  }
 0x30d   :  { %vm848_vm3 = vcmp.gt.f32.partialorder %v841_v40, 0.0  ;;  %v855_v43 = vmul.f32 0.01, %v841_v40  ;;  %v830_v44 = vadd.f32 %v3325_v42, %v612_v9  ;;  %v839_v47 = vadd.f32 %v2830_v30, %v825_v41  ;;  %v3544_v9 = vld [vmem:[%s4664_s4 + $0x8] ss:$0 sps:$4 sm:$0xff]   ;;  %v3566_v41 = vld [vmem:[%s4665_s5 + $0x80] sm:$0xff]  }
 0x30e   :  { %v810_v48 = vpop.f32.mrf.mxu1  ;;  %v859_v56 = vsel %vm845_vm4, %v838_v38, %v852_v46  ;;  %v3563_v38 = vld [vmem:[%s4665_s5 + $0x98] sm:$0xff]  }
 0x30f   :  { %v862_v49 = vsel %vm848_vm3, %v841_v40, %v855_v43  ;;  %v844_v50 = vadd.f32 %v2830_v30, %v830_v44  ;;  %v828_v51 = vadd.f32 %v810_v48, %v604_v11  ;;  %vm846_vm5 = vcmp.gt.f32.partialorder %v839_v47, 0.0  ;;  %v3547_v11 = vld [vmem:[%s4665_s5 + $0x60] sm:$0xff]   ;;  %v3565_v40 = vld [vmem:[%s4665_s5 + $0x88] sm:$0xff]   ;;  %v3567_v42 = vld [vmem:[%s4665_s5 + $0x78] sm:$0xff]  }
 0x310   :  { %v4162_v52 = vpack.c.bf16 %v862_v49, %v861_v45  ;;  %v853_v53 = vmul.f32 0.01, %v839_v47  ;;  %v3326_v54 = vpop.f32.mrf.mxu1  ;;  %v3568_v43 = vld [vmem:[%s4665_s5 + $0x70] sm:$0xff]   ;;  %vm1984_vm3 = vcmask 261120  }
 0x311   :  { %vm851_vm6 = vcmp.gt.f32.partialorder %v844_v50, 0.0  ;;  %v858_v55 = vmul.f32 0.01, %v844_v50  ;;  %v842_v58 = vadd.f32 %v2830_v30, %v828_v51 }
 0x312   :  { %v860_v57 = vsel %vm846_vm5, %v839_v47, %v853_v53  ;;  %v813_v59 = vpop.f32.mrf.mxu1 }
 0x313   :  { %v4164_v60 = vpack.c.bf16 %v860_v57, %v859_v56  ;;  %v865_v61 = vsel %vm851_vm6, %v844_v50, %v858_v55  ;;  %v829_v63 = vadd.f32 %v813_v59, %v607_v14  ;;  %v856_v0 = vmul.f32 0.01, %v842_v58  ;;  %v3555_v14 = vld [vmem:[%s4665_s5 + $0x20] sm:$0xff]  }
 0x314   :  { %v4166_v62 = vpack.c.bf16 %v865_v61, %v865_v61  ;;  %vm849_vm8 = vcmp.gt.f32.partialorder %v842_v58, 0.0  ;;  %v3868_v59 = vmov 0.0   ;;  %v3570_v61 = vld [vmem:[%s4668_s8 + $0x20] sm:$0xff]  }
 0x315   :  { %v843_v1 = vadd.f32 %v2830_v30, %v829_v63  ;;  %v863_v4 = vsel %vm849_vm8, %v842_v58, %v856_v0  ;;  %v3574_v63 = vld [vmem:[%s4668_s8 + $0x10] sm:$0xff]   ;;  %v3576_v0 = vld [vmem:[%s4668_s8 + $0x8] sm:$0xff]  }
 0x316   :  { %3495 = vmatprep.subr.msk.bf16.mxu1 %vm888_vm7, %v4166_v62  ;;  %3496 = vmatprep.subr.msk.bf16.mxu0 %vm888_vm7, %v4166_v62  ;;  %v4174_v2 = vsel %vm888_vm7, %v4166_v62, 0 }
 0x317   :  { %3328 = vmatpush3.bf16.msra.mxu1 %v4174_v2  ;;  %3340 = vmatpush3.bf16.msra.mxu0 %v4174_v2  ;;  %vm850_vm9 = vcmp.gt.f32.partialorder %v843_v1, 0.0  ;;  %v857_v3 = vmul.f32 0.01, %v843_v1 }
 0x319   :  { %v864_v5 = vsel %vm850_vm9, %v843_v1, %v857_v3  ;;  %v2904_v3 = vld [vmem:[#allocation4] ss:$0 sm:$0xff] }
 0x31a   :  { %v4178_v6 = vpack.c.bf16 %v864_v5, %v863_v4 }
 0x31c   :  { %3329 = vmatprep.subr.bf16.mxu1 %v4178_v6  ;;  %3341 = vmatprep.subr.bf16.mxu0 %v4178_v6 }
 0x31d   :  { %3330 = vmatpush3.bf16.msra.mxu1 %v4178_v6  ;;  %3342 = vmatpush3.bf16.msra.mxu0 %v4178_v6 }
 0x31e   :  { %3331 = vmatprep.subr.bf16.mxu1 %v4162_v52  ;;  %3343 = vmatprep.subr.bf16.mxu0 %v4162_v52 }
 0x321   :  { %3332 = vmatpush3.bf16.msra.mxu1 %v4162_v52  ;;  %3344 = vmatpush3.bf16.msra.mxu0 %v4162_v52 }
 0x322   :  { %3333 = vmatprep.subr.bf16.mxu1 %v4164_v60  ;;  %3345 = vmatprep.subr.bf16.mxu0 %v4164_v60 }
 0x325   :  { %3334 = vmatpush3.bf16.msra.mxu1 %v4164_v60  ;;  %3346 = vmatpush3.bf16.msra.mxu0 %v4164_v60 }
 0x326   :  { %3351 = vmatprep.subr.bf16.mxu1 %v3546_v7  ;;  %3369 = vmatprep.subr.bf16.mxu0 %v3553_v8 }
 0x328   :  { %3336 = vmatmul.mubr.msk.bf16.vlgmr.msra.gmra.mxu1 %vm881_vm1, %v3544_v9  ;;  %3348 = vmatmul.mubr.msk.bf16.vlgmr.msra.gmra.mxu0 %vm881_vm1, %v3545_v10 }
 0x329   :  { %3352 = vmatpush3.bf16.msra.mxu1 %v3546_v7  ;;  %3370 = vmatpush3.bf16.msra.mxu0 %v3553_v8 }
 0x32a   :  { %3353 = vmatprep.subr.bf16.mxu1 %v3547_v11  ;;  %3371 = vmatprep.subr.bf16.mxu0 %v3554_v12 }
 0x32d   :  { %3354 = vmatpush3.bf16.msra.mxu1 %v3547_v11  ;;  %3372 = vmatpush3.bf16.msra.mxu0 %v3554_v12 }
 0x32e   :  { %3355 = vmatprep.subr.bf16.mxu1 %v3548_v13  ;;  %3373 = vmatprep.subr.bf16.mxu0 %v3555_v14 }
 0x331   :  { %3356 = vmatpush3.bf16.msra.mxu1 %v3548_v13  ;;  %3374 = vmatpush3.bf16.msra.mxu0 %v3555_v14 }
 0x332   :  { %3357 = vmatprep.subr.bf16.mxu1 %v3549_v15  ;;  %3375 = vmatprep.subr.bf16.mxu0 %v3556_v16 }
 0x335   :  { %3358 = vmatpush3.bf16.msra.mxu1 %v3549_v15  ;;  %3376 = vmatpush3.bf16.msra.mxu0 %v3556_v16 }
 0x336   :  { %3359 = vmatprep.subr.bf16.mxu1 %v3550_v17  ;;  %3377 = vmatprep.subr.bf16.mxu0 %v3557_v18 }
 0x339   :  { %3360 = vmatpush3.bf16.msra.mxu1 %v3550_v17  ;;  %3378 = vmatpush3.bf16.msra.mxu0 %v3557_v18 }
 0x33a   :  { %3361 = vmatprep.subr.bf16.mxu1 %v3551_v19  ;;  %3379 = vmatprep.subr.bf16.mxu0 %v3558_v21 }
 0x33d   :  { %3362 = vmatpush3.bf16.msra.mxu1 %v3551_v19  ;;  %3380 = vmatpush3.bf16.msra.mxu0 %v3558_v21 }
 0x33e   :  { %3363 = vmatprep.subr.bf16.mxu1 %v3552_v20  ;;  %3381 = vmatprep.subr.bf16.mxu0 %v3559_v22 }
 0x341   :  { %3364 = vmatpush3.bf16.msra.mxu1 %v3552_v20  ;;  %3382 = vmatpush3.bf16.msra.mxu0 %v3559_v22 }
 0x342   :  { %3497 = vmatprep.subr.msk.bf16.mxu1 %vm888_vm7, %v4166_v62  ;;  %3399 = vmatprep.subr.bf16.mxu0 %v3562_v23  ;;  %v3572_v62 = vld [vmem:[%s4668_s8 + $0x18] sm:$0xff]  }
 0x3e8   :  { %v3337_v24 = vpop.f32.mrf.mxu1  ;;  %v3349_v25 = vpop.f32.mrf.mxu0 }
 0x3e9   :  { %v941_v30 = vpack.c.bf16 %v3337_v24, %v3337_v24  ;;  %v1023_v36 = vpack.c.bf16 %v3349_v25, %v3349_v25  ;;  %v2906_v24 = vld [vmem:[%s4667_s7 + $0x4] sm:$0xf]  ;;  %v3571_v25 = vld [vmem:[%s4668_s8 + $0x58] sm:$0xff]  }
 0x3ea   :  { %v926_v26 = vpop.f32.mrf.mxu1  ;;  %v1008_v27 = vpop.f32.mrf.mxu0 }
 0x3ec   :  { %v3338_v28 = vpop.f32.mrf.mxu1  ;;  %v3350_v29 = vpop.f32.mrf.mxu0 }
 0x3ed   :  { %v3577_v28 = vld [vmem:[%s4668_s8 + $0x40] sm:$0xff]  }
 0x3ee   :  { %v929_v31 = vpop.f32.mrf.mxu1  ;;  %v1011_v32 = vpop.f32.mrf.mxu0  ;;  %v3578_v29 = vld [vmem:[%s4668_s8] sm:$0xff]  }
 0x3ef   :  { %v940_v33 = vpack.c.bf16 %v929_v31, %v926_v26  ;;  %v1022_v34 = vpack.c.bf16 %v1011_v32, %v1008_v27  ;;  %v3573_v26 = vld [vmem:[%s4668_s8 + $0x50] sm:$0xff]   ;;  %v3575_v27 = vld [vmem:[%s4668_s8 + $0x48] sm:$0xff]  }
 0x3f0   :  { %v3580_v31 = vld [vmem:[%s4668_s8 + $0x30] sm:$0xff]  }
 0x3f1   :  { %3365 = vmatprep.mubr.msk.bf16.mxu1 %vm1081_vm10, %v1022_v34  ;;  %3383 = vmatprep.mubr.msk.bf16.mxu0 %vm1081_vm10, %v940_v33 }
 0x3f2   :  { %3366 = vmatmul.mubr.msk.bf16.vlgmr.msra.gmra.mxu1 %vm1081_vm10, %v1023_v36  ;;  %3384 = vmatmul.mubr.msk.bf16.vlgmr.msra.gmra.mxu0 %vm1081_vm10, %v941_v30  ;;  %v3579_v30 = vld [vmem:[%s4668_s8 + $0x38] sm:$0xff]  }
 0x3f3   :  { %3388 = vmatpush3.bf16.msra.mxu1 %v4174_v2  ;;  %3395 = vmatprep.mubr.msk.bf16.mxu1 %vm881_vm1, %v3560_v35 }
 0x3f4   :  { %3389 = vmatprep.subr.bf16.mxu1 %v4178_v6  ;;  %3400 = vmatpush3.bf16.msra.mxu0 %v3562_v23  ;;  %v1435_v23 = vld [vmem:[%s4667_s7] sm:$0xf] }
 0x3f5   :  { %3401 = vmatprep.subr.bf16.mxu0 %v3563_v38 }
 0x3f7   :  { %3390 = vmatpush3.bf16.msra.mxu1 %v4178_v6 }
 0x3f8   :  { %3391 = vmatprep.subr.bf16.mxu1 %v4162_v52  ;;  %3402 = vmatpush3.bf16.msra.mxu0 %v3563_v38 }
 0x3f9   :  { %3403 = vmatprep.subr.bf16.mxu0 %v3564_v39 }
 0x3fb   :  { %3392 = vmatpush3.bf16.msra.mxu1 %v4162_v52 }
 0x3fc   :  { %3393 = vmatprep.subr.bf16.mxu1 %v4164_v60  ;;  %3404 = vmatpush3.bf16.msra.mxu0 %v3564_v39 }
 0x3fd   :  { %3405 = vmatprep.subr.bf16.mxu0 %v3565_v40 }
 0x3ff   :  { %3394 = vmatpush3.bf16.msra.mxu1 %v4164_v60  ;;  %v3569_v60 = vld [vmem:[%s4668_s8 + $0x28] sm:$0xff]  }
 0x400   :  { %3406 = vmatpush3.bf16.msra.mxu0 %v3565_v40  ;;  %3417 = vmatprep.subr.bf16.mxu1 %v3868_v59 }
 0x401   :  { %3407 = vmatprep.subr.bf16.mxu0 %v3566_v41 }
 0x402   :  { %3396 = vmatmul.mubr.msk.bf16.vlgmr.msra.gmra.mxu1 %vm881_vm1, %v3561_v37 }
 0x403   :  { %3421 = vmatprep.mubr.msk.bf16.mxu1 %vm3869_vm11, %v3868_v59 }
 0x404   :  { %3408 = vmatpush3.bf16.msra.mxu0 %v3566_v41 }
 0x405   :  { %3409 = vmatprep.subr.bf16.mxu0 %v3567_v42 }
 0x408   :  { %3410 = vmatpush3.bf16.msra.mxu0 %v3567_v42  ;;  %v2934_v42 = vld [vmem:[%s4667_s7 + $0x8] sm:$0xf] }
 0x409   :  { %3411 = vmatprep.subr.bf16.mxu0 %v3568_v43 }
 0x40c   :  { %3412 = vmatpush3.bf16.msra.mxu0 %v3568_v43  ;;  %v3581_v43 = vld [vmem:[%s4668_s8 + $0x88] sm:$0xff]  }
 0x40d   :  { %3449 = vmatprep.subr.bf16.mxu0 %v3868_v59 }
 0x4b2   :  { %v3367_v44 = vpop.f32.mrf.mxu1  ;;  %v3385_v45 = vpop.f32.mrf.mxu0 }
 0x4b3   :  { %v1227_v46 = vadd.f32 %v3385_v45, %v3367_v44  ;;  %v3582_v44 = vld [vmem:[%s4668_s8 + $0x80] sm:$0xff]   ;;  %v3583_v45 = vld [vmem:[%s4668_s8 + $0x78] sm:$0xff]  }
 0x4b4   :  { %v1122_v47 = vpop.f32.mrf.mxu1  ;;  %v1218_v48 = vpop.f32.mrf.mxu0 }
 0x4b5   :  { %v1219_v49 = vadd.f32 %v1218_v48, %v1122_v47  ;;  %v3585_v47 = vld [vmem:[%s4668_s8 + $0x68] sm:$0xff]   ;;  %v3586_v48 = vld [vmem:[%s4668_s8 + $0x60] sm:$0xff]  }
 0x4b6   :  { %v3368_v50 = vpop.f32.mrf.mxu1  ;;  %v3386_v51 = vpop.f32.mrf.mxu0 }
 0x4b8   :  { %v1125_v52 = vpop.f32.mrf.mxu1  ;;  %v1221_v1 = vpop.f32.mrf.mxu0 }
 0x4b9   :  { %v1222_v9 = vadd.f32 %v1221_v1, %v1125_v52 }
 0x4c2   :  { %v3397_v53 = vpop.f32.mrf.mxu1 }
 0x4c3   :  { %v1299_v58 = vpack.c.bf16 %v3397_v53, %v3397_v53 }
 0x4c4   :  { %v1284_v54 = vpop.f32.mrf.mxu1 }
 0x4c6   :  { %v3398_v55 = vpop.f32.mrf.mxu1 }
 0x4c8   :  { %v1287_v56 = vpop.f32.mrf.mxu1 }
 0x4c9   :  { %v1298_v57 = vpack.c.bf16 %v1287_v56, %v1284_v54 }
 0x4cb   :  { %3413 = vmatprep.mubr.msk.bf16.mxu0 %vm1081_vm10, %v1298_v57 }
 0x4cc   :  { %3414 = vmatmul.mubr.msk.bf16.vlgmr.msra.gmra.mxu0 %vm1081_vm10, %v1299_v58 }
 0x4cd   :  { %3461 = vmatprep.mubr.msk.bf16.mxu0 %vm3869_vm11, %v3868_v59  ;;  %3450 = vmatpush3.bf16.msra.mxu0 %v3569_v60 }
 0x4ce   :  { %3451 = vmatprep.subr.bf16.mxu0 %v3868_v59 }
 0x4d1   :  { %3452 = vmatpush3.bf16.msra.mxu0 %v3570_v61 }
 0x4d2   :  { %3453 = vmatprep.subr.bf16.mxu0 %v3868_v59 }
 0x4d5   :  { %3454 = vmatpush3.bf16.msra.mxu0 %v3572_v62 }
 0x4d6   :  { %3455 = vmatprep.subr.bf16.mxu0 %v3868_v59 }
 0x4d9   :  { %3456 = vmatpush3.bf16.msra.mxu0 %v3574_v63 }
 0x4da   :  { %3457 = vmatprep.subr.bf16.mxu0 %v3868_v59 }
 0x4dd   :  { %3458 = vmatpush3.bf16.msra.mxu0 %v3576_v0  ;;  %v2955_v0 = vld [vmem:[#allocation6] ss:$0 sm:$0xff] }
 0x4de   :  { %3459 = vmatprep.subr.bf16.mxu0 %v3868_v59 }
 0x4e1   :  { %3460 = vmatpush3.bf16.msra.mxu0 %v3578_v29  ;;  %v3631_v29 = vld [vmem:[%s4673_s13 + $0x14] ss:$8 sps:$4 sm:$0xff]  }
 0x4e2   :  { %3489 = vmatprep.subr.bf16.mxu0 %v3868_v59 }
 0x58c   :  { %v3415_v2 = vpop.f32.mrf.mxu0 }
 0x58d   :  { %v1413_v4 = vadd.f32 %v3415_v2, %v1227_v46  ;;  %v3584_v46 = vld [vmem:[%s4668_s8 + $0x70] sm:$0xff]  }
 0x58e   :  { %v1397_v5 = vpop.f32.mrf.mxu0 }
 0x58f   :  { %v1423_v6 = vadd.f32 %v2904_v3, %v1413_v4  ;;  %v1411_v7 = vadd.f32 %v1397_v5, %v1219_v49 }
 0x590   :  { %v3416_v8 = vpop.f32.mrf.mxu0 }
 0x591   :  { %vm1426_vm12 = vcmp.gt.f32.partialorder %v1423_v6, 0.0  ;;  %v1429_v10 = vmul.f32 0.01, %v1423_v6  ;;  %v1421_v11 = vadd.f32 %v2904_v3, %v1411_v7 }
 0x592   :  { %v1400_v12 = vpop.f32.mrf.mxu0 }
 0x593   :  { %v1412_v13 = vadd.f32 %v1400_v12, %v1222_v9  ;;  %v1432_v14 = vsel %vm1426_vm12, %v1423_v6, %v1429_v10  ;;  %v1427_v16 = vmul.f32 0.01, %v1421_v11  ;;  %vm1424_vm13 = vcmp.gt.f32.partialorder %v1421_v11, 0.0  ;;  %v3589_v9 = vld [vmem:[#allocation9 + $0x24] ss:$16 sps:$4 sm:$0xff]  }
 0x594   :  { %v1434_v15 = vpack.c.bf16 %v1432_v14, %v1432_v14  ;;  %v3587_v12 = vld [vmem:[#allocation9 + $0x20] ss:$16 sps:$4 sm:$0xff]  }
 0x595   :  { %v1422_v17 = vadd.f32 %v2904_v3, %v1412_v13  ;;  %v1430_v20 = vsel %vm1424_vm13, %v1421_v11, %v1427_v16  ;;  %v1865_v11 = vld [vmem:[#allocation7] sm:$0xf]  ;;  %v3592_v13 = vld [vmem:[#allocation9 + $0x4] ss:$16 sps:$4 sm:$0xff]   ;;  %v3590_v14 = vld [vmem:[#allocation9] ss:$16 sps:$4 sm:$0xff]  }
 0x596   :  { %v1441_v18 = vsel %vm888_vm7, %v1434_v15, 0  ;;  %v3595_v15 = vld [vmem:[#allocation9 + $0x2c] ss:$16 sps:$4 sm:$0xff]   ;;  %v3870_v16 = vmov 0  }
 0x597   :  { %vm1425_vm14 = vcmp.gt.f32.partialorder %v1422_v17, 0.0  ;;  %v1428_v19 = vmul.f32 0.01, %v1422_v17  ;;  %3418 = vmatpush3.bf16.msra.mxu1 %v1441_v18 }
 0x598   :  { %3419 = vmatprep.subr.bf16.mxu1 %v3868_v59 }
 0x599   :  { %v1431_v21 = vsel %vm1425_vm14, %v1422_v17, %v1428_v19  ;;  %v3599_v17 = vld [vmem:[%s4673_s13 + $0x70] ss:$8 sps:$4 sm:$0xff]   ;;  %v3604_v19 = vld [vmem:[%s4673_s13 + $0x64] ss:$8 sps:$4 sm:$0xff]  }
 0x59a   :  { %v1433_v22 = vpack.c.bf16 %v1431_v21, %v1430_v20  ;;  %v3602_v20 = vld [vmem:[%s4673_s13 + $0x60] ss:$8 sps:$4 sm:$0xff]   ;;  %v3607_v21 = vld [vmem:[%s4673_s13 + $0x54] ss:$8 sps:$4 sm:$0xff]  }
 0x59c   :  { %3420 = vmatpush3.bf16.msra.mxu1 %v1433_v22 }
 0x59d   :  { %3425 = vmatprep.subr.bf16.mxu1 %v3868_v59 }
 0x59f   :  { %3422 = vmatmul.mubr.msk.bf16.vlgmr.msra.gmra.mxu1 %vm1436_vm15, %v1435_v23  ;;  %v3613_v23 = vld [vmem:[%s4673_s13 + $0x44] ss:$8 sps:$4 sm:$0xff]  }
 0x5a0   :  { %3426 = vmatpush3.bf16.msra.mxu1 %v1441_v18  ;;  %3429 = vmatprep.mubr.msk.bf16.mxu1 %vm3869_vm11, %v3868_v59 }
 0x5a1   :  { %3427 = vmatprep.subr.bf16.mxu1 %v3868_v59 }
 0x5a4   :  { %3428 = vmatpush3.bf16.msra.mxu1 %v1433_v22 }
 0x5a5   :  { %3433 = vmatprep.subr.bf16.mxu1 %v3868_v59 }
 0x5a7   :  { %3430 = vmatmul.mubr.msk.bf16.vlgmr.msra.gmra.mxu1 %vm1436_vm15, %v2906_v24  ;;  %v3611_v24 = vld [vmem:[%s4673_s13 + $0x40] ss:$8 sps:$4 sm:$0xff]  }
 0x5a8   :  { %3434 = vmatpush3.bf16.msra.mxu1 %v3571_v25  ;;  %3445 = vmatprep.mubr.msk.bf16.mxu1 %vm3869_vm11, %v3868_v59  ;;  %v3619_v25 = vld [vmem:[%s4673_s13 + $0x34] ss:$8 sps:$4 sm:$0xff]  }
 0x5a9   :  { %3435 = vmatprep.subr.bf16.mxu1 %v3868_v59 }
 0x5ac   :  { %3436 = vmatpush3.bf16.msra.mxu1 %v3573_v26  ;;  %v3617_v26 = vld [vmem:[%s4673_s13 + $0x30] ss:$8 sps:$4 sm:$0xff]  }
 0x5ad   :  { %3437 = vmatprep.subr.bf16.mxu1 %v3868_v59 }
 0x5b0   :  { %3438 = vmatpush3.bf16.msra.mxu1 %v3575_v27  ;;  %v3625_v27 = vld [vmem:[%s4673_s13 + $0x24] ss:$8 sps:$4 sm:$0xff]  }
 0x5b1   :  { %3439 = vmatprep.subr.bf16.mxu1 %v3868_v59 }
 0x5b4   :  { %3440 = vmatpush3.bf16.msra.mxu1 %v3577_v28  ;;  %v3623_v28 = vld [vmem:[%s4673_s13 + $0x20] ss:$8 sps:$4 sm:$0xff]  }
 0x5b5   :  { %3441 = vmatprep.subr.bf16.mxu1 %v3868_v59 }
 0x5b8   :  { %3442 = vmatpush3.bf16.msra.mxu1 %v3579_v30  ;;  %v3629_v30 = vld [vmem:[%s4673_s13 + $0x10] ss:$8 sps:$4 sm:$0xff]  }
 0x5b9   :  { %3443 = vmatprep.subr.bf16.mxu1 %v3868_v59 }
 0x5bc   :  { %3444 = vmatpush3.bf16.msra.mxu1 %v3580_v31  ;;  %v3637_v31 = vld [vmem:[%s4673_s13 + $0x4] ss:$8 sps:$4 sm:$0xff]  }
 0x5bd   :  { %3465 = vmatprep.subr.bf16.mxu1 %v3868_v59 }
 0x65f   :  { %v1477_v32 = vpop.f32.mrf.mxu1 }
 0x660   :  { %v1483_v33 = vpack.c.bf16 %v1477_v32, %v1477_v32  ;;  %v3635_v32 = vld [vmem:[%s4673_s13] ss:$8 sps:$4 sm:$0xff]  }
 0x661   :  { %v3423_v34 = vpop.f32.mrf.mxu1 }
 0x662   :  { %3462 = vmatmul.mubr.msk.bf16.vlgmr.msra.gmra.mxu0 %vm1591_vm0, %v1483_v33  ;;  %v3643_v33 = vld [vmem:[%s4673_s13 + $0xf4] ss:$8 sps:$4 sm:$0xff]   ;;  %v3641_v34 = vld [vmem:[%s4673_s13 + $0xf0] ss:$8 sps:$4 sm:$0xff]  }
 0x663   :  { %v1480_v35 = vpop.f32.mrf.mxu1  ;;  %3491 = vmatprep.mubr.msk.bf16.mxu0 %vm3869_vm11, %v3868_v59 }
 0x664   :  { %v3649_v35 = vld [vmem:[%s4673_s13 + $0xe4] ss:$8 sps:$4 sm:$0xff]  }
 0x665   :  { %v3424_v36 = vpop.f32.mrf.mxu1 }
 0x666   :  { %v3647_v36 = vld [vmem:[%s4673_s13 + $0xe0] ss:$8 sps:$4 sm:$0xff]  }
 0x667   :  { %v1535_v37 = vpop.f32.mrf.mxu1 }
 0x668   :  { %v1541_v38 = vpack.c.bf16 %v1535_v37, %v1535_v37  ;;  %v3655_v37 = vld [vmem:[%s4673_s13 + $0xd4] ss:$8 sps:$4 sm:$0xff]  }
 0x669   :  { %v3431_v39 = vpop.f32.mrf.mxu1 }
 0x66a   :  { %3446 = vmatmul.mubr.msk.bf16.vlgmr.msra.gmra.mxu1 %vm1591_vm0, %v1541_v38  ;;  %v3653_v38 = vld [vmem:[%s4673_s13 + $0xd0] ss:$8 sps:$4 sm:$0xff]   ;;  %v3661_v39 = vld [vmem:[%s4673_s13 + $0xc4] ss:$8 sps:$4 sm:$0xff]  }
 0x66b   :  { %3466 = vmatpush3.bf16.msra.mxu1 %v1441_v18  ;;  %v1538_v40 = vpop.f32.mrf.mxu1  ;;  %3469 = vmatprep.mubr.msk.bf16.mxu1 %vm3869_vm11, %v3868_v59  ;;  %v3601_v18 = vld [vmem:[%s4673_s13 + $0x74] ss:$8 sps:$4 sm:$0xff]  }
 0x66c   :  { %3467 = vmatprep.subr.bf16.mxu1 %v3868_v59  ;;  %v3659_v40 = vld [vmem:[%s4673_s13 + $0xc0] ss:$8 sps:$4 sm:$0xff]  }
 0x66d   :  { %v3432_v41 = vpop.f32.mrf.mxu1 }
 0x66e   :  { %v3667_v41 = vld [vmem:[%s4673_s13 + $0xb4] ss:$8 sps:$4 sm:$0xff]  }
 0x66f   :  { %3468 = vmatpush3.bf16.msra.mxu1 %v1433_v22  ;;  %v3605_v22 = vld [vmem:[%s4673_s13 + $0x50] ss:$8 sps:$4 sm:$0xff]  }
 0x670   :  { %3473 = vmatprep.subr.bf16.mxu1 %v3868_v59 }
 0x672   :  { %3470 = vmatmul.mubr.msk.bf16.vlgmr.msra.gmra.mxu1 %vm1436_vm15, %v2934_v42  ;;  %v3665_v42 = vld [vmem:[%s4673_s13 + $0xb0] ss:$8 sps:$4 sm:$0xff]  }
 0x673   :  { %3474 = vmatpush3.bf16.msra.mxu1 %v3581_v43  ;;  %3485 = vmatprep.mubr.msk.bf16.mxu1 %vm3869_vm11, %v3868_v59  ;;  %v3673_v43 = vld [vmem:[%s4673_s13 + $0xa4] ss:$8 sps:$4 sm:$0xff]  }
 0x674   :  { %3475 = vmatprep.subr.bf16.mxu1 %v3868_v59 }
 0x677   :  { %3476 = vmatpush3.bf16.msra.mxu1 %v3582_v44  ;;  %v3671_v44 = vld [vmem:[%s4673_s13 + $0xa0] ss:$8 sps:$4 sm:$0xff]  }
 0x678   :  { %3477 = vmatprep.subr.bf16.mxu1 %v3868_v59 }
 0x67b   :  { %3478 = vmatpush3.bf16.msra.mxu1 %v3583_v45 }
 0x67c   :  { %3479 = vmatprep.subr.bf16.mxu1 %v3868_v59 }
 0x67f   :  { %3480 = vmatpush3.bf16.msra.mxu1 %v3584_v46  ;;  %v3593_v46 = vld [vmem:[#allocation9 + $0x28] ss:$16 sps:$4 sm:$0xff]  }
 0x680   :  { %3481 = vmatprep.subr.bf16.mxu1 %v3868_v59 }
 0x683   :  { %3482 = vmatpush3.bf16.msra.mxu1 %v3585_v47 }
 0x684   :  { %3483 = vmatprep.subr.bf16.mxu1 %v3868_v59 }
 0x687   :  { %3484 = vmatpush3.bf16.msra.mxu1 %v3586_v48  ;;  %v3598_v48 = vld [vmem:[#allocation9 + $0xc] ss:$16 sps:$4 sm:$0xff]  }
 0x688   :  { %2482 = vmatprep.subr.bf16.mxu1 %v3601_v18  ;;  %v3685_v18 = vld [vmem:[%s4673_s13 + $0x84] ss:$8 sps:$4 sm:$0xff]  }
 0x722   :  { %v1708_v49 = vpop.f32.mrf.mxu0 }
 0x724   :  { %v3463_v50 = vpop.f32.mrf.mxu0 }
 0x726   :  { %v1711_v51 = vpop.f32.mrf.mxu0 }
 0x727   :  { %v3596_v51 = vld [vmem:[#allocation9 + $0x8] ss:$16 sps:$4 sm:$0xff]  }
 0x728   :  { %v3464_v52 = vpop.f32.mrf.mxu0 }
 0x729   :  { %v3610_v52 = vld [vmem:[%s4673_s13 + $0x174] ss:$8 sps:$4 sm:$0xff]  }
 0x72a   :  { %v1629_v53 = vpop.f32.mrf.mxu1 }
 0x72b   :  { %v1709_v54 = vadd.f32 %v1708_v49, %v1629_v53 }
 0x72c   :  { %v3447_v55 = vpop.f32.mrf.mxu1 }
 0x72d   :  { %v3616_v55 = vld [vmem:[%s4673_s13 + $0x164] ss:$8 sps:$4 sm:$0xff]  }
 0x72e   :  { %v1632_v56 = vpop.f32.mrf.mxu1 }
 0x72f   :  { %v3614_v56 = vld [vmem:[%s4673_s13 + $0x160] ss:$8 sps:$4 sm:$0xff]  }
 0x730   :  { %v3448_v57 = vpop.f32.mrf.mxu1 }
 0x731   :  { %v3622_v57 = vld [vmem:[%s4673_s13 + $0x154] ss:$8 sps:$4 sm:$0xff]  }
 0x732   :  { %v1753_v58 = vpop.f32.mrf.mxu1 }
 0x733   :  { %v1759_v60 = vpack.c.bf16 %v1753_v58, %v1753_v58  ;;  %v3620_v58 = vld [vmem:[%s4673_s13 + $0x150] ss:$8 sps:$4 sm:$0xff]  }
 0x734   :  { %v3471_v61 = vpop.f32.mrf.mxu1 }
 0x735   :  { %3486 = vmatmul.mubr.msk.bf16.vlgmr.msra.gmra.mxu1 %vm1591_vm0, %v1759_v60  ;;  %v3628_v60 = vld [vmem:[%s4673_s13 + $0x144] ss:$8 sps:$4 sm:$0xff]   ;;  %v3626_v61 = vld [vmem:[%s4673_s13 + $0x140] ss:$8 sps:$4 sm:$0xff]  }
 0x736   :  { %v1756_v59 = vpop.f32.mrf.mxu1  ;;  %2483 = vmatpush1.bf16.msra.mxu1 %v3599_v17  ;;  %v3683_v17 = vld [vmem:[%s4673_s13 + $0x80] ss:$8 sps:$4 sm:$0xff]  }
 0x737   :  { %2484 = vmatprep.subr.bf16.mxu1 %v3604_v19  ;;  %v3634_v59 = vld [vmem:[%s4673_s13 + $0x134] ss:$8 sps:$4 sm:$0xff]   ;;  %v3686_v19 = vld [vmem:[%s4673_s13 + $0x1a0] ss:$8 sps:$4 sm:$0xff]  }
 0x738   :  { %v3472_v62 = vpop.f32.mrf.mxu1 }
 0x739   :  { %v3632_v62 = vld [vmem:[%s4673_s13 + $0x130] ss:$8 sps:$4 sm:$0xff]  }
 0x73a   :  { %2485 = vmatpush1.bf16.msra.mxu1 %v3602_v20  ;;  %v3688_v20 = vld [vmem:[%s4673_s13 + $0x1a4] ss:$8 sps:$4 sm:$0xff]  }
 0x73b   :  { %2486 = vmatprep.subr.bf16.mxu1 %v3607_v21  ;;  %v3691_v21 = vld [vmem:[%s4673_s13 + $0x194] ss:$8 sps:$4 sm:$0xff]  }
 0x73e   :  { %2487 = vmatpush1.bf16.msra.mxu1 %v3605_v22  ;;  %v3689_v22 = vld [vmem:[%s4673_s13 + $0x190] ss:$8 sps:$4 sm:$0xff]  }
 0x73f   :  { %2488 = vmatprep.subr.bf16.mxu1 %v3613_v23  ;;  %v3692_v23 = vld [vmem:[%s4673_s13 + $0x180] ss:$8 sps:$4 sm:$0xff]  }
 0x742   :  { %2489 = vmatpush1.bf16.msra.mxu1 %v3611_v24  ;;  %v3694_v24 = vld [vmem:[%s4673_s13 + $0x184] ss:$8 sps:$4 sm:$0xff]  }
 0x743   :  { %2490 = vmatprep.subr.bf16.mxu1 %v3619_v25  ;;  %v3695_v25 = vld [vmem:[%s4675_s15 + $0x78] sm:$0xff]  }
 0x746   :  { %2491 = vmatpush1.bf16.msra.mxu1 %v3617_v26  ;;  %v1924_v26 = vlaneseq }
 0x747   :  { %2492 = vmatprep.subr.bf16.mxu1 %v3625_v27 }
 0x748   :  { %v4595_v27 = vshrl.u32 %v1924_v26, 7 }
 0x74a   :  { %2493 = vmatpush1.bf16.msra.mxu1 %v3623_v28  ;;  %v1926_v28 = vsub.s32 0, %v4595_v27 }
 0x74b   :  { %2494 = vmatprep.subr.bf16.mxu1 %v3631_v29  ;;  %v1922_v29 = vld [vmem:[#allocation10] sm:$0xf] }
 0x74e   :  { %2495 = vmatpush1.bf16.msra.mxu1 %v3629_v30  ;;  %v1930_v30 = vsub.s32 1, %v4595_v27 }
 0x74f   :  { %2496 = vmatprep.subr.bf16.mxu1 %v3637_v31  ;;  %v1927_v31 = vrot.slane %v1922_v29, %v1926_v28 }
 0x752   :  { %2497 = vmatpush1.bf16.msra.mxu1 %v3635_v32  ;;  %v1931_v32 = vrot.slane %v1922_v29, %v1930_v30 }
 0x753   :  { %2498 = vmatprep.subr.bf16.mxu1 %v3643_v33 }
 0x756   :  { %2499 = vmatpush2.bf16.msra.mxu1 %v3641_v34 }
 0x757   :  { %2500 = vmatprep.subr.bf16.mxu1 %v3649_v35  ;;  %v1934_v35 = vsub.s32 2, %v4595_v27 }
 0x75a   :  { %2501 = vmatpush2.bf16.msra.mxu1 %v3647_v36 }
 0x75b   :  { %2502 = vmatprep.subr.bf16.mxu1 %v3655_v37 }
 0x75e   :  { %2503 = vmatpush2.bf16.msra.mxu1 %v3653_v38 }
 0x75f   :  { %2504 = vmatprep.subr.bf16.mxu1 %v3661_v39  ;;  %v1938_v39 = vsub.s32 3, %v4595_v27 }
 0x762   :  { %2505 = vmatpush2.bf16.msra.mxu1 %v3659_v40 }
 0x763   :  { %2506 = vmatprep.subr.bf16.mxu1 %v3667_v41 }
 0x766   :  { %2507 = vmatpush2.bf16.msra.mxu1 %v3665_v42  ;;  %v1935_v42 = vrot.slane %v1922_v29, %v1934_v35 }
 0x767   :  { %2508 = vmatprep.subr.bf16.mxu1 %v3673_v43 }
 0x76a   :  { %2509 = vmatpush2.bf16.msra.mxu1 %v3671_v44 }
 0x7f5   :  { %v1846_v63 = vpop.f32.mrf.mxu1 }
 0x7f6   :  { %v1852_v1 = vadd.f32 %v1846_v63, %v1709_v54  ;;  %v3608_v54 = vld [vmem:[%s4673_s13 + $0x170] ss:$8 sps:$4 sm:$0xff]   ;;  %v3640_v63 = vld [vmem:[%s4673_s13 + $0x124] ss:$8 sps:$4 sm:$0xff]  }
 0x7f7   :  { %v3487_v2 = vpop.f32.mrf.mxu1 }
 0x7f8   :  { %v1860_v3 = vadd.f32 %v2955_v0, %v1852_v1  ;;  %v3638_v0 = vld [vmem:[%s4673_s13 + $0x120] ss:$8 sps:$4 sm:$0xff]   ;;  %v3646_v1 = vld [vmem:[%s4673_s13 + $0x114] ss:$8 sps:$4 sm:$0xff]   ;;  %v3644_v2 = vld [vmem:[%s4673_s13 + $0x110] ss:$8 sps:$4 sm:$0xff]  }
 0x7f9   :  { %v1849_v4 = vpop.f32.mrf.mxu1 }
 0x7fa   :  { %vm1861_vm1 = vcmp.gt.f32.partialorder %v1860_v3, 0.0  ;;  %v1862_v5 = vmul.f32 0.01, %v1860_v3  ;;  %v3650_v4 = vld [vmem:[%s4673_s13 + $0x100] ss:$8 sps:$4 sm:$0xff]  }
 0x7fb   :  { %v3488_v6 = vpop.f32.mrf.mxu1 }
 0x7fc   :  { %v1863_v7 = vsel %vm1861_vm1, %v1860_v3, %v1862_v5  ;;  %v3652_v3 = vld [vmem:[%s4673_s13 + $0x104] ss:$8 sps:$4 sm:$0xff]   ;;  %v3658_v5 = vld [vmem:[%s4673_s13 + $0x1f4] ss:$8 sps:$4 sm:$0xff]   ;;  %v3656_v6 = vld [vmem:[%s4673_s13 + $0x1f0] ss:$8 sps:$4 sm:$0xff]  }
 0x7fd   :  { %v1864_v8 = vpack.c.bf16 %v1863_v7, %v1863_v7  ;;  %v3664_v7 = vld [vmem:[%s4673_s13 + $0x1e4] ss:$8 sps:$4 sm:$0xff]  }
 0x7ff   :  { %v1871_v10 = vsel %vm888_vm7, %v1864_v8, 0  ;;  %v3662_v8 = vld [vmem:[%s4673_s13 + $0x1e0] ss:$8 sps:$4 sm:$0xff]  }
 0x800   :  { %3490 = vmatpush3.bf16.msra.mxu0 %v1871_v10  ;;  %v3668_v10 = vld [vmem:[%s4673_s13 + $0x1d0] ss:$8 sps:$4 sm:$0xff]  }
 0x801   :  { %2000 = vmatprep.subr.bf16.mxu0 %v3589_v9  ;;  %v3670_v9 = vld [vmem:[%s4673_s13 + $0x1d4] ss:$8 sps:$4 sm:$0xff]  }
 0x803   :  { %3492 = vmatmul.mubr.msk.bf16.vlgmr.msra.gmra.mxu0 %vm1866_vm2, %v1865_v11  ;;  %v3676_v11 = vld [vmem:[%s4673_s13 + $0x1c4] ss:$8 sps:$4 sm:$0xff]  }
 0x804   :  { %2001 = vmatpush1.bf16.msra.mxu0 %v3587_v12  ;;  %2020 = vmatprep.mubr.bf16.mxu0 %v3870_v16  ;;  %v3674_v12 = vld [vmem:[%s4673_s13 + $0x1c0] ss:$8 sps:$4 sm:$0xff]  }
 0x805   :  { %2002 = vmatprep.subr.bf16.mxu0 %v3592_v13  ;;  %v3679_v13 = vld [vmem:[%s4673_s13 + $0x94] ss:$8 sps:$4 sm:$0xff]  }
 0x806   :  { %2510 = vmatprep.subr.bf16.mxu1 %v3679_v13 }
 0x808   :  { %2003 = vmatpush1.bf16.msra.mxu0 %v3590_v14  ;;  %v3682_v14 = vld [vmem:[%s4673_s13 + $0x1b4] ss:$8 sps:$4 sm:$0xff]  }
 0x809   :  { %2041 = vmatprep.subr.bf16.mxu0 %v3595_v15  ;;  %v3677_v15 = vld [vmem:[%s4673_s13 + $0x90] ss:$8 sps:$4 sm:$0xff]  }
 0x80a   :  { %2511 = vmatpush2.bf16.msra.mxu1 %v3677_v15 }
 0x80b   :  { %2512 = vmatprep.subr.bf16.mxu1 %v3685_v18 }
 0x80e   :  { %2513 = vmatpush2.bf16.msra.mxu1 %v3683_v17 }
 0x80f   :  { %3185 = vmatprep.subr.bf16.mxu1 %v3695_v25 }
 0x8c3   :  { %v1907_v45 = vpop.f32.mrf.mxu0 }
 0x8c4   :  { %v1913_v47 = vpack.c.bf16 %v1907_v45, %v1907_v45  ;;  %v1939_v45 = vrot.slane %v1922_v29, %v1938_v39 }
 0x8c5   :  { %v3493_v49 = vpop.f32.mrf.mxu0 }
 0x8c6   :  { %2965 = vmatmul.mubr.msk.bf16.vlgmr.msra.gmra.mxu0 %vm1984_vm3, %v1913_v47  ;;  %v3696_v49 = vld [vmem:[%s4675_s15 + $0x38] sm:$0xff]  }
 0x8c7   :  { %v1910_v50 = vpop.f32.mrf.mxu0  ;;  %2042 = vmatpush1.bf16.msra.mxu0 %v3593_v46  ;;  %2061 = vmatprep.mubr.bf16.mxu0 %v3870_v16  ;;  %v3680_v16 = vld [vmem:[%s4673_s13 + $0x1b0] ss:$8 sps:$4 sm:$0xff]  }
 0x8c8   :  { %2043 = vmatprep.subr.bf16.mxu0 %v3598_v48 }
 0x8c9   :  { %v3494_v53 = vpop.f32.mrf.mxu0 }
 0x8cb   :  { %2044 = vmatpush1.bf16.msra.mxu0 %v3596_v51 }
 0x8cc   :  { %2523 = vmatprep.subr.bf16.mxu0 %v3610_v52  ;;  %v3697_v52 = vld [vmem:[%s4675_s15 + $0x70] sm:$0xff]  }
 0x8ce   :  { %2966 = vmatmul.mubr.msk.bf16.vlgmr.msra.gmra.mxu0 %vm1984_vm3, %v1913_v47 }
 0x8cf   :  { %2524 = vmatpush1.bf16.msra.mxu0 %v3608_v54 }
 0x8d0   :  { %2525 = vmatprep.subr.bf16.mxu0 %v3616_v55 }
 0x8d3   :  { %2526 = vmatpush1.bf16.msra.mxu0 %v3614_v56 }
 0x8d4   :  { %2527 = vmatprep.subr.bf16.mxu0 %v3622_v57  ;;  %v3698_v57 = vld [vmem:[%s4675_s15 + $0x30] sm:$0xff]  }
 0x8d7   :  { %2528 = vmatpush1.bf16.msra.mxu0 %v3620_v58 }
 0x8d8   :  { %2529 = vmatprep.subr.bf16.mxu0 %v3628_v60  ;;  %v3699_v60 = vld [vmem:[%s4675_s15 + $0x68] sm:$0xff]  }
 0x8db   :  { %2530 = vmatpush1.bf16.msra.mxu0 %v3626_v61 }
 0x8dc   :  { %2531 = vmatprep.subr.bf16.mxu0 %v3634_v59 }
 0x8df   :  { %2532 = vmatpush1.bf16.msra.mxu0 %v3632_v62 }
 0x8e0   :  { %2533 = vmatprep.subr.bf16.mxu0 %v3640_v63 }
 0x8e3   :  { %2534 = vmatpush1.bf16.msra.mxu0 %v3638_v0  ;;  %v3700_v0 = vld [vmem:[%s4675_s15 + $0x28] sm:$0xff]  }
 0x8e4   :  { %2535 = vmatprep.subr.bf16.mxu0 %v3646_v1 }
 0x8e7   :  { %2536 = vmatpush1.bf16.msra.mxu0 %v3644_v2  ;;  %v3701_v2 = vld [vmem:[%s4675_s15 + $0x60] sm:$0xff]  }
 0x8e8   :  { %2537 = vmatprep.subr.bf16.mxu0 %v3652_v3  ;;  %v3702_v3 = vld [vmem:[%s4675_s15 + $0x20] sm:$0xff]  }
 0x8eb   :  { %2538 = vmatpush1.bf16.msra.mxu0 %v3650_v4  ;;  %v3703_v4 = vld [vmem:[%s4675_s15 + $0x58] sm:$0xff]  }
 0x8ec   :  { %2539 = vmatprep.subr.bf16.mxu0 %v3658_v5  ;;  %v3704_v5 = vld [vmem:[%s4675_s15 + $0x18] sm:$0xff]  }
 0x8ef   :  { %2540 = vmatpush2.bf16.msra.mxu0 %v3656_v6  ;;  %v3705_v6 = vld [vmem:[%s4675_s15 + $0x50] sm:$0xff]  }
 0x8f0   :  { %2541 = vmatprep.subr.bf16.mxu0 %v3664_v7  ;;  %v3706_v7 = vld [vmem:[%s4675_s15 + $0x10] sm:$0xff]  }
 0x8f3   :  { %2542 = vmatpush2.bf16.msra.mxu0 %v3662_v8  ;;  %v3707_v8 = vld [vmem:[%s4675_s15 + $0x48] sm:$0xff]  }
 0x8f4   :  { %2543 = vmatprep.subr.bf16.mxu0 %v3670_v9  ;;  %v3708_v9 = vld [vmem:[%s4675_s15 + $0x8] sm:$0xff]  }
 0x8f7   :  { %2544 = vmatpush2.bf16.msra.mxu0 %v3668_v10  ;;  %v3709_v10 = vld [vmem:[%s4675_s15 + $0x40] sm:$0xff]  }
 0x8f8   :  { %2545 = vmatprep.subr.bf16.mxu0 %v3676_v11  ;;  %v3710_v11 = vld [vmem:[%s4675_s15] sm:$0xff]  }
 0x8fb   :  { %2546 = vmatpush2.bf16.msra.mxu0 %v3674_v12  ;;  %v2150_v12 = vld [vmem:[%s4674_s14] sm:$0x3] }
 0x8fc   :  { %2547 = vmatprep.subr.bf16.mxu0 %v3682_v14  ;;  %v2155_v15 = vrot.slane %v2150_v12, %v1926_v28  ;;  %v2159_v17 = vrot.slane %v2150_v12, %v1930_v30  ;;  %v3031_v30 = vld [vmem:[#allocation12] ss:$0 sm:$0xff] }
 0x8ff   :  { %2548 = vmatpush2.bf16.msra.mxu0 %v3680_v16 }
 0x900   :  { %2549 = vmatprep.subr.bf16.mxu0 %v3688_v20 }
 0x903   :  { %2550 = vmatpush2.bf16.msra.mxu0 %v3686_v19 }
 0x904   :  { %2551 = vmatprep.subr.bf16.mxu0 %v3691_v21 }
 0x907   :  { %2552 = vmatpush2.bf16.msra.mxu0 %v3689_v22 }
 0x908   :  { %2553 = vmatprep.subr.bf16.mxu0 %v3694_v24 }
 0x90b   :  { %2554 = vmatpush2.bf16.msra.mxu0 %v3692_v23 }
 0x986   :  { %v2022_v33 = vpop.f32.mrf.mxu0 }
 0x987   :  { %v2023_v34 = vadd.f32 %v2022_v33, %v1927_v31 }
 0x988   :  { %v2024_v36 = vpop.f32.mrf.mxu0 }
 0x989   :  { %vm2070_vm4 = vcmp.gt.f32.partialorder %v2023_v34, 0.0  ;;  %v2074_v37 = vmul.f32 0.01, %v2023_v34  ;;  %v2025_v38 = vadd.f32 %v2024_v36, %v1931_v32 }
 0x98a   :  { %v2026_v40 = vpop.f32.mrf.mxu0 }
 0x98b   :  { %vm2071_vm5 = vcmp.gt.f32.partialorder %v2025_v38, 0.0  ;;  %v2075_v41 = vmul.f32 0.01, %v2025_v38  ;;  %v2078_v43 = vsel %vm2070_vm4, %v2023_v34, %v2074_v37 }
 0x98c   :  { %v2027_v44 = vpop.f32.mrf.mxu0  ;;  %v2082_v50 = vpack.c.bf16 %v2078_v43, %v2078_v43 }
 0x98d   :  { %v2079_v46 = vsel %vm2071_vm5, %v2025_v38, %v2075_v41 }
 0x98e   :  { %v2063_v47 = vpop.f32.mrf.mxu0  ;;  %v2083_v48 = vpack.c.bf16 %v2079_v46, %v2079_v46 }
 0x98f   :  { %v2064_v51 = vadd.f32 %v2063_v47, %v1935_v42 }
 0x990   :  { %v2065_v53 = vpop.f32.mrf.mxu0  ;;  %2514 = vmatprep.mubr.bf16.mxu1 %v2083_v48 }
 0x991   :  { %vm2072_vm6 = vcmp.gt.f32.partialorder %v2064_v51, 0.0  ;;  %v2076_v54 = vmul.f32 0.01, %v2064_v51  ;;  %v2066_v55 = vadd.f32 %v2065_v53, %v1939_v45  ;;  %2515 = vmatmul.mubr.bf16.vlgmr.msra.gmra.mxu1 %v2082_v50 }
 0x992   :  { %v2067_v56 = vpop.f32.mrf.mxu0  ;;  %3186 = vmatpush3.bf16.msra.mxu1 %v3696_v49 }
 0x993   :  { %vm2073_vm7 = vcmp.gt.f32.partialorder %v2066_v55, 0.0  ;;  %v2077_v58 = vmul.f32 0.01, %v2066_v55  ;;  %3187 = vmatprep.subr.bf16.mxu1 %v3697_v52  ;;  %v2080_v61 = vsel %vm2072_vm6, %v2064_v51, %v2076_v54 }
 0x994   :  { %v2068_v59 = vpop.f32.mrf.mxu0  ;;  %v2084_v1 = vpack.c.bf16 %v2080_v61, %v2080_v61 }
 0x995   :  { %v2081_v62 = vsel %vm2073_vm7, %v2066_v55, %v2077_v58 }
 0x996   :  { %v2085_v63 = vpack.c.bf16 %v2081_v62, %v2081_v62  ;;  %3188 = vmatpush3.bf16.msra.mxu1 %v3698_v57 }
 0x997   :  { %3189 = vmatprep.subr.bf16.mxu1 %v3699_v60 }
 0x998   :  { %2555 = vmatprep.mubr.bf16.mxu0 %v2085_v63 }
 0x999   :  { %2556 = vmatmul.mubr.bf16.vlgmr.msra.gmra.mxu0 %v2084_v1 }
 0x99a   :  { %3190 = vmatpush3.bf16.msra.mxu1 %v3700_v0 }
 0x99b   :  { %3191 = vmatprep.subr.bf16.mxu1 %v3701_v2 }
 0x99e   :  { %3192 = vmatpush3.bf16.msra.mxu1 %v3702_v3 }
 0x99f   :  { %3193 = vmatprep.subr.bf16.mxu1 %v3703_v4 }
 0x9a2   :  { %3194 = vmatpush3.bf16.msra.mxu1 %v3704_v5 }
 0x9a3   :  { %3195 = vmatprep.subr.bf16.mxu1 %v3705_v6 }
 0x9a6   :  { %3196 = vmatpush3.bf16.msra.mxu1 %v3706_v7 }
 0x9a7   :  { %3197 = vmatprep.subr.bf16.mxu1 %v3707_v8 }
 0x9aa   :  { %3198 = vmatpush3.bf16.msra.mxu1 %v3708_v9 }
 0x9ab   :  { %3199 = vmatprep.subr.bf16.mxu1 %v3709_v10 }
 0x9ae   :  { %3200 = vmatpush3.bf16.msra.mxu1 %v3710_v11 }
 0xa51   :  { %v2516_v13 = vpop.f32.mrf.mxu1 }
 0xa52   :  { %v2517_v19 = vadd.f32 %v2516_v13, %v2155_v15 }
 0xa53   :  { %v2518_v14 = vpop.f32.mrf.mxu1 }
 0xa54   :  { %v2519_v21 = vadd.f32 %v2518_v14, %v2159_v17 }
 0xa55   :  { %v2520_v16 = vpop.f32.mrf.mxu1 }
 0xa57   :  { %v2521_v18 = vpop.f32.mrf.mxu1 }
 0xa59   :  { %v2557_v20 = vpop.f32.mrf.mxu0 }
 0xa5a   :  { %v2558_v22 = vadd.f32 %v2557_v20, %v2517_v19 }
 0xa5b   :  { %v2559_v23 = vpop.f32.mrf.mxu0 }
 0xa5c   :  { %vm2564_vm8 = vcmp.gt.f32.partialorder %v2558_v22, 0.0  ;;  %v2566_v24 = vmul.f32 0.01, %v2558_v22  ;;  %v2560_v25 = vadd.f32 %v2559_v23, %v2519_v21 }
 0xa5d   :  { %v2561_v26 = vpop.f32.mrf.mxu0 }
 0xa5e   :  { %vm2565_vm9 = vcmp.gt.f32.partialorder %v2560_v25, 0.0  ;;  %v2567_v29 = vmul.f32 0.01, %v2560_v25  ;;  %v2568_v31 = vsel %vm2564_vm8, %v2558_v22, %v2566_v24 }
 0xa5f   :  { %v2562_v32 = vpop.f32.mrf.mxu0  ;;  %v2570_v34 = vpack.c.bf16 %v2568_v31, %v2568_v31 }
 0xa60   :  { %v2569_v33 = vsel %vm2565_vm9, %v2560_v25, %v2567_v29 }
 0xa61   :  { %v2571_v28 = vpack.c.bf16 %v2569_v33, %v2569_v33 }
 0xa63   :  { %2739 = vmatprep.mubr.bf16.mxu1 %v2571_v28 }
 0xa64   :  { %2740 = vmatmul.mubr.bf16.vlgmr.msra.gmra.mxu1 %v2570_v34 }
 0xb24   :  { %v3201_v27 = vpop.f32.mrf.mxu1 }
 0xb26   :  { %v3202_v35 = vpop.f32.mrf.mxu1 }
 0xb27   :  { %v3203_v36 = vadd.f32 %v3202_v35, %v3201_v27 }
 0xb28   :  { %v3204_v37 = vpop.f32.mrf.mxu1 }
 0xb29   :  { %v2742_v38 = vadd.f32 %v3203_v36, %v3031_v30 }
 0xb2a   :  { %v3205_v39 = vpop.f32.mrf.mxu1 }
 0xb2b   :  { %2747 = vst [vmem:[%s4677_s17] sm:$0xff] %v2742_v38 }
 0xb2c   :  { %2752 = vsyncpa [#allocation3], 1 }
 0xb2d   :  { %2753 = vsyncpa [#allocation5], 1 }
 0xb2e   :  { %2754 = vsyncpa [#allocation8], 1 }
 0xb2f   :  { %2755 = vsyncpa [#allocation11], 1 }

</bundles_post_ra>
